<compile_context>
chip_gen: v5e
topology: v5e:2x2
jax: 0.10.0
libtpu: 0.0.40
codegen_flags: <defaults>
</compile_context>

<pallas_src>
import functools

import jax
import jax.numpy as jnp
from jax import lax
from jax.experimental import pallas as pl
from jax.experimental.pallas import tpu as pltpu

EPS = 1e-5


# ----------------------------------------------------------------------------
# Fused kernel: conv1(1x1)+BN+ReLU -> deconv(3x3,s2)+BN+ReLU -> conv2(1x1)+BN+ReLU
#
# Parity decomposition of ConvTranspose2d(k=3, s=2, p=1, output_padding=1)
# (tap index k = kh*3 + kw):
#   y[2i  ,2j  ] = h[i  ,j  ]@W4
#   y[2i  ,2j+1] = h[i  ,j+1]@W3 + h[i  ,j]@W5
#   y[2i+1,2j  ] = h[i+1,j  ]@W1 + h[i  ,j]@W7
#   y[2i+1,2j+1] = h[i+1,j+1]@W0 + h[i+1,j]@W2 + h[i,j+1]@W6 + h[i,j]@W8
# ----------------------------------------------------------------------------
def _decode_block_kernel(xa_ref, xh_ref,
                         w1_ref, s1_ref, b1_ref,
                         w00_ref, w01_ref, w10_ref, w11_ref,
                         sd_ref, bd_ref,
                         w2_ref, s2_ref, b2_ref,
                         o_ref, *, th, W, H):
    f32 = jnp.float32
    bf16 = jnp.bfloat16
    c4 = w1_ref.shape[1]
    R = th * W                                              # flattened rows in this tile

    # ---- conv1: tile rows + 1-row halo in ONE matmul, folded BN + ReLU (f32) ----
    xcat = jnp.concatenate([xa_ref[0], xh_ref[0]], axis=0)          # (R+W, C) bf16
    h = jnp.dot(xcat, w1_ref[...], preferred_element_type=f32)
    h = jnp.maximum(h * s1_ref[...] + b1_ref[...], 0.0)             # (R+W, c4) f32

    # Zero the halo rows when this is the last tile (no next image row).  Use a
    # select (not a multiply) so non-finite values in the wrapped halo tile
    # cannot leak into masked positions.
    ridx = lax.broadcasted_iota(jnp.int32, (R + W, 1), 0)
    halo_ok = (pl.program_id(1) + 1) * th < H
    h = jnp.where(jnp.logical_or(ridx < R, halo_ok), h, 0.0)

    # "j+1" neighbor: in-register shift by one flattened position (aligned slice
    # of [h | zero sublane-tile]); positions whose column is W-1 would wrap to
    # the next row and are masked to zero instead.
    hs = jnp.concatenate([h, jnp.zeros((8, c4), f32)], axis=0)[1:R + W + 1]
    hs = jnp.where(ridx % W != W - 1, hs, 0.0)

    hb = h.astype(bf16)                                              # MXU operands once
    hsb = hs.astype(bf16)

    # ---- transposed conv: 4 wide MXU matmuls, zero-padded slabs -> [ee|eo|oe|oo] ----
    def tap(x, w_ref):
        return jnp.dot(x, w_ref[...], preferred_element_type=f32)

    yw = (tap(hb[:R], w00_ref)        # h[i  ,j  ] -> W4|W5|W7|W8
          + tap(hsb[:R], w01_ref)     # h[i  ,j+1] ->  0|W3| 0|W6
          + tap(hb[W:], w10_ref)      # h[i+1,j  ] ->  0| 0|W1|W2
          + tap(hsb[W:], w11_ref))    # h[i+1,j+1] ->  0| 0| 0|W0          (R, 4*c4) f32

    # ---- deconv BN+ReLU, then conv2 (block-diagonal over parities) + BN + ReLU ----
    d = jnp.maximum(yw * sd_ref[...] + bd_ref[...], 0.0)
    z = jnp.dot(d.astype(bf16), w2_ref[...], preferred_element_type=f32)
    z = jnp.maximum(z * s2_ref[...] + b2_ref[...], 0.0)

    # Single lane-dense bf16 store: parities concatenated along channels.
    o_ref[0] = z.astype(o_ref.dtype)


# ----------------------------------------------------------------------------
# Wrapper: NCHW in -> NCHW out (like the PyTorch module); output is bf16.
# ----------------------------------------------------------------------------
def decode_block_forward(x_nchw, params, *, row_tile=None):
    N, C, H, W = x_nchw.shape
    c4 = params["w1"].shape[1]
    cout = params["w2bd"].shape[1] // 4
    if W % 8 != 0:
        raise ValueError("W must be a multiple of 8 (TPU sublane tiling).")

    # Row tile (image rows per grid step): target ~2048 flattened rows per tile,
    # bounded by a ~20 MiB per-step VMEM working-set estimate, divisor of H.
    if row_tile is None:
        bytes_per_row = 6 * C + 40 * cout + 52 * c4
        budget = 20 * 1024 * 1024
        max_rows = max(W, budget // max(bytes_per_row, 1))
        row_tile = max(1, min(H, int(min(2048, max_rows)) // W))
    row_tile = max(1, min(int(row_tile), H))
    while H % row_tile:
        row_tile -= 1
    # Keep >= 2 parallel grid steps when possible so a 2-TC chip (v7x) is not half idle.
    if N * (H // row_tile) < 2 and row_tile > 1:
        cand = row_tile // 2
        while cand > 1 and H % cand:
            cand -= 1
        row_tile = max(1, cand)
    th = row_tile
    num_tiles = H // th
    R = th * W

    # bf16 BEFORE the layout transpose (halves wrapper-side HBM traffic).
    x_flat = jnp.transpose(x_nchw.astype(jnp.bfloat16), (0, 2, 3, 1)).reshape(N, H * W, C)

    kernel = functools.partial(_decode_block_kernel, th=th, W=W, H=H)
    const = lambda n, t: (0, 0)

    y4 = pl.pallas_call(
        kernel,
        out_shape=jax.ShapeDtypeStruct((N, H * W, 4 * cout), jnp.bfloat16),
        grid=(N, num_tiles),
        in_specs=[
            pl.BlockSpec((1, R, C), lambda n, t: (n, t, 0)),                     # tile rows
            pl.BlockSpec((1, W, C),
                         lambda n, t: (n, ((t + 1) % num_tiles) * th, 0)),       # 1-row halo
            pl.BlockSpec((C, c4), const),                                        # w1
            pl.BlockSpec((1, c4), const), pl.BlockSpec((1, c4), const),          # s1, b1
            pl.BlockSpec((c4, 4 * c4), const),                                   # w00 slab
            pl.BlockSpec((c4, 4 * c4), const),                                   # w01 slab
            pl.BlockSpec((c4, 4 * c4), const),                                   # w10 slab
            pl.BlockSpec((c4, 4 * c4), const),                                   # w11 slab
            pl.BlockSpec((1, 4 * c4), const), pl.BlockSpec((1, 4 * c4), const),  # sd4, bd4
            pl.BlockSpec((4 * c4, 4 * cout), const),                             # w2 block-diag
            pl.BlockSpec((1, 4 * cout), const), pl.BlockSpec((1, 4 * cout), const),
        ],
        out_specs=pl.BlockSpec((1, R, 4 * cout), lambda n, t: (n, t, 0)),
        compiler_params=pltpu.CompilerParams(
            dimension_semantics=("parallel", "parallel"),
            vmem_limit_bytes=40 * 1024 * 1024,   # fits v7x's 64 MiB/TC; ample on v5e/v6e
        ),
    )(x_flat, x_flat,
      params["w1"], params["s1"], params["b1"],
      params["w00"], params["w01"], params["w10"], params["w11"],
      params["sd4"], params["bd4"],
      params["w2bd"], params["s24"], params["b24"])

    # Interleave parities [ee|eo|oe|oo] -> (N, 2H, 2W, cout) -> NCHW, all in bf16.
    y = y4.reshape(N, H, W, 2, 2, cout)
    y = jnp.transpose(y, (0, 1, 3, 2, 4, 5)).reshape(N, 2 * H, 2 * W, cout)
    return jnp.transpose(y, (0, 3, 1, 2))


# ----------------------------------------------------------------------------
# Parameters (deterministic; shapes match the PyTorch module __init__)
# ----------------------------------------------------------------------------
def init_params(key, in_channels, out_channels):
    c4 = in_channels // 4
    ks = jax.random.split(key, 9)

    def bn_params(k, c):
        k1, k2, k3, k4 = jax.random.split(k, 4)
        gamma = jax.random.uniform(k1, (c,), jnp.float32, 0.5, 1.5)
        beta = 0.1 * jax.random.normal(k2, (c,), jnp.float32)
        mean = 0.1 * jax.random.normal(k3, (c,), jnp.float32)
        var = jax.random.uniform(k4, (c,), jnp.float32, 0.5, 1.5)
        return gamma, beta, mean, var

    def fold(bn, conv_bias):
        gamma, beta, mean, var = bn
        s = gamma / jnp.sqrt(var + EPS)
        b = beta + (conv_bias - mean) * s
        return s.reshape(1, -1), b.reshape(1, -1)

    # conv1: Conv2d(in, c4, 1)  weight (c4, in, 1, 1), bias (c4,)
    w1_t = 0.1 * jax.random.normal(ks[0], (c4, in_channels, 1, 1), jnp.float32)
    b1 = 0.1 * jax.random.normal(ks[1], (c4,), jnp.float32)
    bn1 = bn_params(ks[2], c4)
    s1, be1 = fold(bn1, b1)
    w1 = jnp.transpose(w1_t[:, :, 0, 0], (1, 0))                    # (Cin, c4)

    # deconv: ConvTranspose2d(c4, c4, 3)  weight (c4_in, c4_out, 3, 3), bias (c4,)
    wd_t = 0.1 * jax.random.normal(ks[3], (c4, c4, 3, 3), jnp.float32)
    bdc = 0.1 * jax.random.normal(ks[4], (c4,), jnp.float32)
    bnd = bn_params(ks[5], c4)
    sd, bed = fold(bnd, bdc)
    wd = jnp.transpose(wd_t, (2, 3, 0, 1)).reshape(9, c4, c4)       # (kh*3+kw, Cin, Cout)
    zero = jnp.zeros((c4, c4), jnp.float32)
    # Zero-padded tap slabs mapping each shifted input straight into [ee|eo|oe|oo]:
    w00 = jnp.concatenate([wd[4], wd[5], wd[7], wd[8]], axis=1)     # h[i  ,j  ]
    w01 = jnp.concatenate([zero, wd[3], zero, wd[6]], axis=1)       # h[i  ,j+1]
    w10 = jnp.concatenate([zero, zero, wd[1], wd[2]], axis=1)       # h[i+1,j  ]
    w11 = jnp.concatenate([zero, zero, zero, wd[0]], axis=1)        # h[i+1,j+1]

    # conv2: Conv2d(c4, out, 1)  weight (out, c4, 1, 1), bias (out,)
    w2_t = 0.1 * jax.random.normal(ks[6], (out_channels, c4, 1, 1), jnp.float32)
    b2 = 0.1 * jax.random.normal(ks[7], (out_channels,), jnp.float32)
    bn2 = bn_params(ks[8], out_channels)
    s2, be2 = fold(bn2, b2)
    w2 = jnp.transpose(w2_t[:, :, 0, 0], (1, 0))                    # (c4, Cout)
    # Block-diagonal conv2 weight: one wide MXU matmul over all four parities.
    w2bd = jnp.zeros((4 * c4, 4 * out_channels), jnp.float32)
    for p in range(4):
        w2bd = w2bd.at[p * c4:(p + 1) * c4,
                       p * out_channels:(p + 1) * out_channels].set(w2)

    bf = jnp.bfloat16
    params = dict(
        w1=w1.astype(bf), s1=s1, b1=be1,
        w00=w00.astype(bf), w01=w01.astype(bf), w10=w10.astype(bf), w11=w11.astype(bf),
        sd4=jnp.tile(sd, (1, 4)), bd4=jnp.tile(bed, (1, 4)),
        w2bd=w2bd.astype(bf), s24=jnp.tile(s2, (1, 4)), b24=jnp.tile(be2, (1, 4)))
    raw = dict(w1_t=w1_t, b1=b1, bn1=bn1, wd_t=wd_t, bd=bdc, bnd=bnd,
               w2_t=w2_t, b2=b2, bn2=bn2)
    return params, raw


# ----------------------------------------------------------------------------
# Dense XLA reference (independent formulation) for a correctness check
# ----------------------------------------------------------------------------
def reference_forward(x_nchw, raw):
    def bn_relu(y, bn, bias):
        gamma, beta, mean, var = bn
        y = y + bias[None, :, None, None]
        y = (y - mean[None, :, None, None]) * (
            gamma / jnp.sqrt(var + EPS))[None, :, None, None] + beta[None, :, None, None]
        return jnp.maximum(y, 0.0)

    y = jnp.einsum("nchw,oc->nohw", x_nchw, raw["w1_t"][:, :, 0, 0])
    y = bn_relu(y, raw["bn1"], raw["b1"])
    # ConvTranspose2d(k=3, s=2, p=1, output_padding=1) == dilated conv with flipped kernel.
    w_eq = jnp.transpose(raw["wd_t"], (1, 0, 2, 3))[:, :, ::-1, ::-1]
    y = lax.conv_general_dilated(
        y, w_eq, window_strides=(1, 1), padding=((1, 2), (1, 2)),
        lhs_dilation=(2, 2), dimension_numbers=("NCHW", "OIHW", "NCHW"))
    y = bn_relu(y, raw["bnd"], raw["bd"])
    y = jnp.einsum("nchw,oc->nohw", y, raw["w2_t"][:, :, 0, 0])
    y = bn_relu(y, raw["bn2"], raw["b2"])
    return y


if __name__ == "__main__":
    in_channels, out_channels = 16, 8
    N, H, W = 2, 16, 16

    key = jax.random.PRNGKey(0)
    kx, kp = jax.random.split(key)
    x = jax.random.normal(kx, (N, in_channels, H, W), jnp.float32)
    params, raw = init_params(kp, in_channels, out_channels)

    # row_tile=8 -> grid (N, 2): exercises the cross-tile halo path; the default
    # heuristic (single full-H tile) exercises the masked last-tile path.
    fwd_tiled = jax.jit(lambda xx, pp: decode_block_forward(xx, pp, row_tile=8))
    fwd_auto = jax.jit(decode_block_forward)

    out = fwd_tiled(x, params)
    jax.block_until_ready(out)
    out_auto = fwd_auto(x, params)
    jax.block_until_ready(out_auto)

    assert out.shape == (N, out_channels, 2 * H, 2 * W), out.shape
    out_f = out.astype(jnp.float32)
    out_auto_f = out_auto.astype(jnp.float32)
    assert bool(jnp.all(jnp.isfinite(out_f)))

    # bf16-tolerant check against a dense XLA reference of the same module.
    xq = x.astype(jnp.bfloat16).astype(jnp.float32)
    ref = reference_forward(xq, raw)
    assert bool(jnp.allclose(out_f, ref, rtol=6e-2, atol=6e-2)), \
        float(jnp.max(jnp.abs(out_f - ref)))
    assert bool(jnp.allclose(out_auto_f, ref, rtol=6e-2, atol=6e-2)), \
        float(jnp.max(jnp.abs(out_auto_f - ref)))

    print("KERNEL_OK")
</pallas_src>

<mosaic_0001>
module attributes {stable_mosaic.version = 11 : i64} {
  func.func @_decode_block_kernel(%arg0: i32, %arg1: i32, %arg2: memref<1x128x16xbf16, #tpu.memory_space<vmem>>, %arg3: memref<1x16x16xbf16, #tpu.memory_space<vmem>>, %arg4: memref<16x4xbf16, #tpu.memory_space<vmem>>, %arg5: memref<1x4xf32, #tpu.memory_space<vmem>>, %arg6: memref<1x4xf32, #tpu.memory_space<vmem>>, %arg7: memref<4x16xbf16, #tpu.memory_space<vmem>>, %arg8: memref<4x16xbf16, #tpu.memory_space<vmem>>, %arg9: memref<4x16xbf16, #tpu.memory_space<vmem>>, %arg10: memref<4x16xbf16, #tpu.memory_space<vmem>>, %arg11: memref<1x16xf32, #tpu.memory_space<vmem>>, %arg12: memref<1x16xf32, #tpu.memory_space<vmem>>, %arg13: memref<16x32xbf16, #tpu.memory_space<vmem>>, %arg14: memref<1x32xf32, #tpu.memory_space<vmem>>, %arg15: memref<1x32xf32, #tpu.memory_space<vmem>>, %arg16: memref<1x128x32xbf16, #tpu.memory_space<vmem>>) attributes {dimension_semantics = [#tpu.dimension_semantics<parallel>, #tpu.dimension_semantics<parallel>], iteration_bounds = array<i64: 2, 2>, scalar_prefetch = 0 : i64, scratch_operands = 0 : i64, tpu.core_type = #tpu.core_type<tc>, window_params = [{transform_indices = @transform_0, window_bounds = array<i64: 1, 128, 16>}, {transform_indices = @transform_1, window_bounds = array<i64: 1, 16, 16>}, {pipeline_mode = #tpu.pipeline_mode<synchronous>, transform_indices = @transform_2, window_bounds = array<i64: 16, 4>}, {pipeline_mode = #tpu.pipeline_mode<synchronous>, transform_indices = @transform_3, window_bounds = array<i64: 1, 4>}, {pipeline_mode = #tpu.pipeline_mode<synchronous>, transform_indices = @transform_4, window_bounds = array<i64: 1, 4>}, {pipeline_mode = #tpu.pipeline_mode<synchronous>, transform_indices = @transform_5, window_bounds = array<i64: 4, 16>}, {pipeline_mode = #tpu.pipeline_mode<synchronous>, transform_indices = @transform_6, window_bounds = array<i64: 4, 16>}, {pipeline_mode = #tpu.pipeline_mode<synchronous>, transform_indices = @transform_7, window_bounds = array<i64: 4, 16>}, {pipeline_mode = #tpu.pipeline_mode<synchronous>, transform_indices = @transform_8, window_bounds = array<i64: 4, 16>}, {pipeline_mode = #tpu.pipeline_mode<synchronous>, transform_indices = @transform_9, window_bounds = array<i64: 1, 16>}, {pipeline_mode = #tpu.pipeline_mode<synchronous>, transform_indices = @transform_10, window_bounds = array<i64: 1, 16>}, {pipeline_mode = #tpu.pipeline_mode<synchronous>, transform_indices = @transform_11, window_bounds = array<i64: 16, 32>}, {pipeline_mode = #tpu.pipeline_mode<synchronous>, transform_indices = @transform_12, window_bounds = array<i64: 1, 32>}, {pipeline_mode = #tpu.pipeline_mode<synchronous>, transform_indices = @transform_13, window_bounds = array<i64: 1, 32>}, {transform_indices = @transform_14, window_bounds = array<i64: 1, 128, 32>}]} {
    %c0 = arith.constant 0 : index
    %c0_0 = arith.constant 0 : index
    %c0_1 = arith.constant 0 : index
    %0 = vector.load %arg2[%c0, %c0_0, %c0_1] : memref<1x128x16xbf16, #tpu.memory_space<vmem>>, vector<1x128x16xbf16>
    %1 = vector.shape_cast %0 : vector<1x128x16xbf16> to vector<128x16xbf16>
    %c0_2 = arith.constant 0 : index
    %c0_3 = arith.constant 0 : index
    %c0_4 = arith.constant 0 : index
    %2 = vector.load %arg3[%c0_2, %c0_3, %c0_4] : memref<1x16x16xbf16, #tpu.memory_space<vmem>>, vector<1x16x16xbf16>
    %3 = vector.shape_cast %2 : vector<1x16x16xbf16> to vector<16x16xbf16>
    %4 = tpu.concatenate %1, %3 in 0 : vector<128x16xbf16>, vector<16x16xbf16> -> vector<144x16xbf16>
    %c0_5 = arith.constant 0 : index
    %c0_6 = arith.constant 0 : index
    %5 = vector.load %arg4[%c0_5, %c0_6] : memref<16x4xbf16, #tpu.memory_space<vmem>>, vector<16x4xbf16>
    %cst = arith.constant dense<0.000000e+00> : vector<144x4xf32>
    %6 = tpu.matmul %4, %5, %cst {dimension_numbers = #tpu.dot_dimension_numbers<[1], [0], [0], [1], [0, 0, 1, 1], [], []>} : vector<144x16xbf16>, vector<16x4xbf16>, vector<144x4xf32> -> vector<144x4xf32>
    %c0_7 = arith.constant 0 : index
    %c0_8 = arith.constant 0 : index
    %7 = vector.load %arg5[%c0_7, %c0_8] : memref<1x4xf32, #tpu.memory_space<vmem>>, vector<1x4xf32>
    %8 = vector.broadcast %7 : vector<1x4xf32> to vector<144x4xf32>
    %9 = arith.mulf %6, %8 : vector<144x4xf32>
    %c0_9 = arith.constant 0 : index
    %c0_10 = arith.constant 0 : index
    %10 = vector.load %arg6[%c0_9, %c0_10] : memref<1x4xf32, #tpu.memory_space<vmem>>, vector<1x4xf32>
    %11 = vector.broadcast %10 : vector<1x4xf32> to vector<144x4xf32>
    %12 = arith.addf %9, %11 : vector<144x4xf32>
    %cst_11 = arith.constant 0.000000e+00 : f32
    %13 = vector.broadcast %cst_11 : f32 to vector<144x4xf32>
    %14 = arith.maximumf %12, %13 : vector<144x4xf32>
    %15 = tpu.iota {dimensions = array<i32: 0>} : vector<144x1xi32>
    %c1_i32 = arith.constant 1 : i32
    %16 = arith.addi %arg1, %c1_i32 : i32
    %c8_i32 = arith.constant 8 : i32
    %17 = arith.muli %16, %c8_i32 : i32
    %c16_i32 = arith.constant 16 : i32
    %18 = arith.cmpi slt, %17, %c16_i32 : i32
    %c128_i32 = arith.constant 128 : i32
    %19 = vector.broadcast %c128_i32 : i32 to vector<144x1xi32>
    %20 = arith.cmpi slt, %15, %19 : vector<144x1xi32>
    %21 = vector.broadcast %18 : i1 to vector<144x1xi1>
    %22 = arith.ori %20, %21 : vector<144x1xi1>
    %cst_12 = arith.constant 0.000000e+00 : f32
    %23 = vector.shape_cast %22 : vector<144x1xi1> to vector<144x1xi1>
    %24 = vector.broadcast %23 : vector<144x1xi1> to vector<144x4xi1>
    %25 = vector.broadcast %cst_12 : f32 to vector<144x4xf32>
    %26 = arith.select %24, %14, %25 : vector<144x4xi1>, vector<144x4xf32>
    %cst_13 = arith.constant 0.000000e+00 : f32
    %27 = vector.broadcast %cst_13 : f32 to vector<8x4xf32>
    %28 = tpu.concatenate %26, %27 in 0 : vector<144x4xf32>, vector<8x4xf32> -> vector<152x4xf32>
    %29 = vector.extract_strided_slice %28 {offsets = [1, 0], sizes = [144, 4], strides = [1, 1]} : vector<152x4xf32> to vector<144x4xf32>
    %c16_i32_14 = arith.constant 16 : i32
    %c0_i32 = arith.constant 0 : i32
    %30 = arith.cmpi eq, %c16_i32_14, %c0_i32 : i32
    %c1_i32_15 = arith.constant 1 : i32
    %31 = arith.select %30, %c1_i32_15, %c16_i32_14 : i32
    %32 = vector.broadcast %31 : i32 to vector<144x1xi32>
    %33 = arith.remsi %15, %32 : vector<144x1xi32>
    %c0_i32_16 = arith.constant 0 : i32
    %34 = vector.broadcast %c0_i32_16 : i32 to vector<144x1xi32>
    %35 = arith.cmpi ne, %33, %34 : vector<144x1xi32>
    %c0_i32_17 = arith.constant 0 : i32
    %36 = vector.broadcast %c0_i32_17 : i32 to vector<144x1xi32>
    %37 = arith.cmpi slt, %33, %36 : vector<144x1xi32>
    %c0_i32_18 = arith.constant 0 : i32
    %38 = arith.cmpi slt, %31, %c0_i32_18 : i32
    %39 = vector.broadcast %38 : i1 to vector<144x1xi1>
    %40 = vector.broadcast %39 : vector<144x1xi1> to vector<144x1xi1>
    %41 = arith.xori %37, %40 : vector<144x1xi1>
    %42 = arith.andi %41, %35 : vector<144x1xi1>
    %43 = vector.broadcast %31 : i32 to vector<144x1xi32>
    %44 = arith.addi %33, %43 : vector<144x1xi32>
    %45 = arith.select %42, %44, %33 : vector<144x1xi1>, vector<144x1xi32>
    %c15_i32 = arith.constant 15 : i32
    %46 = vector.broadcast %c15_i32 : i32 to vector<144x1xi32>
    %47 = arith.cmpi ne, %45, %46 : vector<144x1xi32>
    %cst_19 = arith.constant 0.000000e+00 : f32
    %48 = vector.shape_cast %47 : vector<144x1xi1> to vector<144x1xi1>
    %49 = vector.broadcast %48 : vector<144x1xi1> to vector<144x4xi1>
    %50 = vector.broadcast %cst_19 : f32 to vector<144x4xf32>
    %51 = arith.select %49, %29, %50 : vector<144x4xi1>, vector<144x4xf32>
    %52 = arith.truncf %26 : vector<144x4xf32> to vector<144x4xbf16>
    %53 = arith.truncf %51 : vector<144x4xf32> to vector<144x4xbf16>
    %54 = vector.extract_strided_slice %52 {offsets = [0, 0], sizes = [128, 4], strides = [1, 1]} : vector<144x4xbf16> to vector<128x4xbf16>
    %c0_20 = arith.constant 0 : index
    %c0_21 = arith.constant 0 : index
    %55 = vector.load %arg7[%c0_20, %c0_21] : memref<4x16xbf16, #tpu.memory_space<vmem>>, vector<4x16xbf16>
    %cst_22 = arith.constant dense<0.000000e+00> : vector<128x16xf32>
    %56 = tpu.matmul %54, %55, %cst_22 {dimension_numbers = #tpu.dot_dimension_numbers<[1], [0], [0], [1], [0, 0, 1, 1], [], []>} : vector<128x4xbf16>, vector<4x16xbf16>, vector<128x16xf32> -> vector<128x16xf32>
    %57 = vector.extract_strided_slice %53 {offsets = [0, 0], sizes = [128, 4], strides = [1, 1]} : vector<144x4xbf16> to vector<128x4xbf16>
    %c0_23 = arith.constant 0 : index
    %c0_24 = arith.constant 0 : index
    %58 = vector.load %arg8[%c0_23, %c0_24] : memref<4x16xbf16, #tpu.memory_space<vmem>>, vector<4x16xbf16>
    %cst_25 = arith.constant dense<0.000000e+00> : vector<128x16xf32>
    %59 = tpu.matmul %57, %58, %cst_25 {dimension_numbers = #tpu.dot_dimension_numbers<[1], [0], [0], [1], [0, 0, 1, 1], [], []>} : vector<128x4xbf16>, vector<4x16xbf16>, vector<128x16xf32> -> vector<128x16xf32>
    %60 = arith.addf %56, %59 : vector<128x16xf32>
    %61 = vector.extract_strided_slice %52 {offsets = [16, 0], sizes = [128, 4], strides = [1, 1]} : vector<144x4xbf16> to vector<128x4xbf16>
    %c0_26 = arith.constant 0 : index
    %c0_27 = arith.constant 0 : index
    %62 = vector.load %arg9[%c0_26, %c0_27] : memref<4x16xbf16, #tpu.memory_space<vmem>>, vector<4x16xbf16>
    %cst_28 = arith.constant dense<0.000000e+00> : vector<128x16xf32>
    %63 = tpu.matmul %61, %62, %cst_28 {dimension_numbers = #tpu.dot_dimension_numbers<[1], [0], [0], [1], [0, 0, 1, 1], [], []>} : vector<128x4xbf16>, vector<4x16xbf16>, vector<128x16xf32> -> vector<128x16xf32>
    %64 = arith.addf %60, %63 : vector<128x16xf32>
    %65 = vector.extract_strided_slice %53 {offsets = [16, 0], sizes = [128, 4], strides = [1, 1]} : vector<144x4xbf16> to vector<128x4xbf16>
    %c0_29 = arith.constant 0 : index
    %c0_30 = arith.constant 0 : index
    %66 = vector.load %arg10[%c0_29, %c0_30] : memref<4x16xbf16, #tpu.memory_space<vmem>>, vector<4x16xbf16>
    %cst_31 = arith.constant dense<0.000000e+00> : vector<128x16xf32>
    %67 = tpu.matmul %65, %66, %cst_31 {dimension_numbers = #tpu.dot_dimension_numbers<[1], [0], [0], [1], [0, 0, 1, 1], [], []>} : vector<128x4xbf16>, vector<4x16xbf16>, vector<128x16xf32> -> vector<128x16xf32>
    %68 = arith.addf %64, %67 : vector<128x16xf32>
    %c0_32 = arith.constant 0 : index
    %c0_33 = arith.constant 0 : index
    %69 = vector.load %arg11[%c0_32, %c0_33] : memref<1x16xf32, #tpu.memory_space<vmem>>, vector<1x16xf32>
    %70 = vector.broadcast %69 : vector<1x16xf32> to vector<128x16xf32>
    %71 = arith.mulf %68, %70 : vector<128x16xf32>
    %c0_34 = arith.constant 0 : index
    %c0_35 = arith.constant 0 : index
    %72 = vector.load %arg12[%c0_34, %c0_35] : memref<1x16xf32, #tpu.memory_space<vmem>>, vector<1x16xf32>
    %73 = vector.broadcast %72 : vector<1x16xf32> to vector<128x16xf32>
    %74 = arith.addf %71, %73 : vector<128x16xf32>
    %cst_36 = arith.constant 0.000000e+00 : f32
    %75 = vector.broadcast %cst_36 : f32 to vector<128x16xf32>
    %76 = arith.maximumf %74, %75 : vector<128x16xf32>
    %77 = arith.truncf %76 : vector<128x16xf32> to vector<128x16xbf16>
    %c0_37 = arith.constant 0 : index
    %c0_38 = arith.constant 0 : index
    %78 = vector.load %arg13[%c0_37, %c0_38] : memref<16x32xbf16, #tpu.memory_space<vmem>>, vector<16x32xbf16>
    %cst_39 = arith.constant dense<0.000000e+00> : vector<128x32xf32>
    %79 = tpu.matmul %77, %78, %cst_39 {dimension_numbers = #tpu.dot_dimension_numbers<[1], [0], [0], [1], [0, 0, 1, 1], [], []>} : vector<128x16xbf16>, vector<16x32xbf16>, vector<128x32xf32> -> vector<128x32xf32>
    %c0_40 = arith.constant 0 : index
    %c0_41 = arith.constant 0 : index
    %80 = vector.load %arg14[%c0_40, %c0_41] : memref<1x32xf32, #tpu.memory_space<vmem>>, vector<1x32xf32>
    %81 = vector.broadcast %80 : vector<1x32xf32> to vector<128x32xf32>
    %82 = arith.mulf %79, %81 : vector<128x32xf32>
    %c0_42 = arith.constant 0 : index
    %c0_43 = arith.constant 0 : index
    %83 = vector.load %arg15[%c0_42, %c0_43] : memref<1x32xf32, #tpu.memory_space<vmem>>, vector<1x32xf32>
    %84 = vector.broadcast %83 : vector<1x32xf32> to vector<128x32xf32>
    %85 = arith.addf %82, %84 : vector<128x32xf32>
    %cst_44 = arith.constant 0.000000e+00 : f32
    %86 = vector.broadcast %cst_44 : f32 to vector<128x32xf32>
    %87 = arith.maximumf %85, %86 : vector<128x32xf32>
    %88 = arith.truncf %87 : vector<128x32xf32> to vector<128x32xbf16>
    %c0_45 = arith.constant 0 : index
    %c0_46 = arith.constant 0 : index
    %c0_47 = arith.constant 0 : index
    %89 = vector.load %arg16[%c0_45, %c0_46, %c0_47] : memref<1x128x32xbf16, #tpu.memory_space<vmem>>, vector<1x128x32xbf16>
    %90 = vector.shape_cast %89 : vector<1x128x32xbf16> to vector<128x32xbf16>
    %91 = vector.shape_cast %88 : vector<128x32xbf16> to vector<1x128x32xbf16>
    tpu.vector_store %arg16[%c0_45, %c0_46, %c0_47], %91 {strides = array<i32>} : memref<1x128x32xbf16, #tpu.memory_space<vmem>>, vector<1x128x32xbf16>,
    return
  }
  func.func @transform_0(%arg0: i32, %arg1: i32) -> (i32, i32, i32) {
    %c0_i32 = arith.constant 0 : i32
    %c0_i32_0 = arith.constant 0 : i32
    return %arg0, %arg1, %c0_i32 : i32, i32, i32
  }
  func.func @transform_1(%arg0: i32, %arg1: i32) -> (i32, i32, i32) {
    %c1_i32 = arith.constant 1 : i32
    %0 = arith.addi %arg1, %c1_i32 : i32
    %c2_i32 = arith.constant 2 : i32
    %c0_i32 = arith.constant 0 : i32
    %1 = arith.cmpi eq, %c2_i32, %c0_i32 : i32
    %c1_i32_0 = arith.constant 1 : i32
    %2 = arith.select %1, %c1_i32_0, %c2_i32 : i32
    %3 = arith.remsi %0, %2 : i32
    %c0_i32_1 = arith.constant 0 : i32
    %4 = arith.cmpi ne, %3, %c0_i32_1 : i32
    %c0_i32_2 = arith.constant 0 : i32
    %5 = arith.cmpi slt, %3, %c0_i32_2 : i32
    %c0_i32_3 = arith.constant 0 : i32
    %6 = arith.cmpi slt, %2, %c0_i32_3 : i32
    %7 = arith.xori %5, %6 : i1
    %8 = arith.andi %7, %4 : i1
    %9 = arith.addi %3, %2 : i32
    %10 = arith.select %8, %9, %3 : i32
    %c8_i32 = arith.constant 8 : i32
    %11 = arith.muli %10, %c8_i32 : i32
    %c0_i32_4 = arith.constant 0 : i32
    %c0_i32_5 = arith.constant 0 : i32
    return %arg0, %11, %c0_i32_4 : i32, i32, i32
  }
  func.func @transform_2(%arg0: i32, %arg1: i32) -> (i32, i32) {
    %c0_i32 = arith.constant 0 : i32
    %c0_i32_0 = arith.constant 0 : i32
    %c0_i32_1 = arith.constant 0 : i32
    return %c0_i32, %c0_i32_0 : i32, i32
  }
  func.func @transform_3(%arg0: i32, %arg1: i32) -> (i32, i32) {
    %c0_i32 = arith.constant 0 : i32
    %c0_i32_0 = arith.constant 0 : i32
    %c0_i32_1 = arith.constant 0 : i32
    return %c0_i32, %c0_i32_0 : i32, i32
  }
  func.func @transform_4(%arg0: i32, %arg1: i32) -> (i32, i32) {
    %c0_i32 = arith.constant 0 : i32
    %c0_i32_0 = arith.constant 0 : i32
    %c0_i32_1 = arith.constant 0 : i32
    return %c0_i32, %c0_i32_0 : i32, i32
  }
  func.func @transform_5(%arg0: i32, %arg1: i32) -> (i32, i32) {
    %c0_i32 = arith.constant 0 : i32
    %c0_i32_0 = arith.constant 0 : i32
    %c0_i32_1 = arith.constant 0 : i32
    return %c0_i32, %c0_i32_0 : i32, i32
  }
  func.func @transform_6(%arg0: i32, %arg1: i32) -> (i32, i32) {
    %c0_i32 = arith.constant 0 : i32
    %c0_i32_0 = arith.constant 0 : i32
    %c0_i32_1 = arith.constant 0 : i32
    return %c0_i32, %c0_i32_0 : i32, i32
  }
  func.func @transform_7(%arg0: i32, %arg1: i32) -> (i32, i32) {
    %c0_i32 = arith.constant 0 : i32
    %c0_i32_0 = arith.constant 0 : i32
    %c0_i32_1 = arith.constant 0 : i32
    return %c0_i32, %c0_i32_0 : i32, i32
  }
  func.func @transform_8(%arg0: i32, %arg1: i32) -> (i32, i32) {
    %c0_i32 = arith.constant 0 : i32
    %c0_i32_0 = arith.constant 0 : i32
    %c0_i32_1 = arith.constant 0 : i32
    return %c0_i32, %c0_i32_0 : i32, i32
  }
  func.func @transform_9(%arg0: i32, %arg1: i32) -> (i32, i32) {
    %c0_i32 = arith.constant 0 : i32
    %c0_i32_0 = arith.constant 0 : i32
    %c0_i32_1 = arith.constant 0 : i32
    return %c0_i32, %c0_i32_0 : i32, i32
  }
  func.func @transform_10(%arg0: i32, %arg1: i32) -> (i32, i32) {
    %c0_i32 = arith.constant 0 : i32
    %c0_i32_0 = arith.constant 0 : i32
    %c0_i32_1 = arith.constant 0 : i32
    return %c0_i32, %c0_i32_0 : i32, i32
  }
  func.func @transform_11(%arg0: i32, %arg1: i32) -> (i32, i32) {
    %c0_i32 = arith.constant 0 : i32
    %c0_i32_0 = arith.constant 0 : i32
    %c0_i32_1 = arith.constant 0 : i32
    return %c0_i32, %c0_i32_0 : i32, i32
  }
  func.func @transform_12(%arg0: i32, %arg1: i32) -> (i32, i32) {
    %c0_i32 = arith.constant 0 : i32
    %c0_i32_0 = arith.constant 0 : i32
    %c0_i32_1 = arith.constant 0 : i32
    return %c0_i32, %c0_i32_0 : i32, i32
  }
  func.func @transform_13(%arg0: i32, %arg1: i32) -> (i32, i32) {
    %c0_i32 = arith.constant 0 : i32
    %c0_i32_0 = arith.constant 0 : i32
    %c0_i32_1 = arith.constant 0 : i32
    return %c0_i32, %c0_i32_0 : i32, i32
  }
  func.func @transform_14(%arg0: i32, %arg1: i32) -> (i32, i32, i32) {
    %c0_i32 = arith.constant 0 : i32
    %c0_i32_0 = arith.constant 0 : i32
    return %arg0, %arg1, %c0_i32 : i32, i32, i32
  }
}

</mosaic_0001>

<bundles_post_ra>
// kernel: _lambda_.1
= control target key start
LH: loop header
LB: loop body
LE: loop exit
PB: predicated region body
PF: predicated region fallthrough
CT: control target
= control target key end

     0   :  { %s2404_s29 = smov 0   ;;  %s2406_s30 = smov 0   ;;  %s2830_s0 = inlined_call_operand.vmem [shape: bf16[2,256,16], index: 0, kind: input, shape index: {}, may-alias: {0,1}]   ;;  %s2831_s1 = inlined_call_operand.vmem [shape: bf16[2,256,16], index: 1, kind: input, shape index: {}, may-alias: {0,1}]   ;;  %s2832_s2 = inlined_call_operand.vmem [shape: bf16[16,4], index: 2, kind: input, shape index: {}]   ;;  %s2833_s3 = inlined_call_operand.vmem [shape: f32[1,4], index: 3, kind: input, shape index: {}]   ;;  %s2834_s4 = inlined_call_operand.vmem [shape: f32[1,4], index: 4, kind: input, shape index: {}]   ;;  %s2835_s5 = inlined_call_operand.vmem [shape: bf16[4,16], index: 5, kind: input, shape index: {}]   ;;  %s2836_s6 = inlined_call_operand.vmem [shape: bf16[4,16], index: 6, kind: input, shape index: {}]   ;;  %s2837_s7 = inlined_call_operand.vmem [shape: bf16[4,16], index: 7, kind: input, shape index: {}]   ;;  %s2838_s8 = inlined_call_operand.vmem [shape: bf16[4,16], index: 8, kind: input, shape index: {}]   ;;  %s2839_s9 = inlined_call_operand.vmem [shape: f32[1,16], index: 9, kind: input, shape index: {}]   ;;  %s2840_s10 = inlined_call_operand.vmem [shape: f32[1,16], index: 10, kind: input, shape index: {}]   ;;  %s2841_s11 = inlined_call_operand.vmem [shape: bf16[16,32], index: 11, kind: input, shape index: {}]   ;;  %s2842_s12 = inlined_call_operand.vmem [shape: f32[1,32], index: 12, kind: input, shape index: {}]   ;;  %s2843_s13 = inlined_call_operand.vmem [shape: f32[1,32], index: 13, kind: input, shape index: {}]   ;;  %s2844_s14 = inlined_call_operand.vmem [shape: bf16[2,256,32], index: 14, kind: output, shape index: {}]  }
   0x1   :  { %2847 = sst [smem:[#allocation3_spill]] %s2830_s0  ;;  %s2408_s15 = smov 0  }
   0x2   :  { %2848 = sst [smem:[#allocation4_spill]] %s2832_s2  ;;  %s2410_s16 = smov 0  }
   0x3   :  { %s2412_s17 = smov 0  }
   0x4 LB: > { %s33_s18 = sadd.s32 1, %s2318_s15  ;;  %s36_s19 = sadd.s32 1, %s2322_s16  ;;  %s2326_s17 = sphi %s2412_s17, %s24_s17   ;;  %s2322_s16 = sphi %s2410_s16, %s2860_s16   ;;  %s2318_s15 = sphi %s2408_s15, %s2859_s15   ;;  %s2314_s30 = sphi %s2406_s30, %s2858_s30   ;;  %s2310_s29 = sphi %s2404_s29, %s2857_s29  }
   0x5   : > { %p34_p0 = scmp.ge.s32.totalorder %s33_s18, 2  ;;  %p2115_p1 = scmp.ge.s32.totalorder %s2326_s17, 1 }
   0x6   : > { %p506_p2 = scmp.lt.s32.totalorder %s2326_s17, 5 }
   0x7   : > { %s2862_s18 = smov (%p34_p0, %s33_s18), 0  ;;  %s2864_s19 = smov (!%p34_p0, %s36_s19), %s2322_s16 }
   0x8   : > { %p507_p3 = pnand %p2115_p1, %p506_p2  ;;  %p38_p4 = scmp.ge.s32.totalorder %s2864_s19, 2 }
   0x9   : > { %s2850_s2 = sld [smem:[#allocation4_spill]] (!%p507_p3)  ;;  %s2116_s22 = sshll.u32 (!%p507_p3), %s2310_s29, 4 }
   0xa   : > { %s2866_s19 = smov (%p38_p4, %s2864_s19), 0  ;;  %510 = sbr.rel (%p507_p3) target bundleno = 721 (0x2d1), region = 76 }
   0xb   : > { %2849 = sst [smem:[#allocation2_spill]] %s2866_s19  ;;  %p584_p5 = scmp.lt.s32.totalorder (!%p507_p3), %s2314_s30, 1 }
   0xc   : > { %p586_p6 = scmp.lt.s32.totalorder (!%p507_p3), %s2116_s22, 31  ;;  %s2851_s0 = sld [smem:[#allocation3_spill]] (!%p507_p3) }
   0xd   : > { %s593_s20 = sadd.s32 (!%p507_p3), 1, %s2310_s29 }
   0xe   : > { %s595_s21 = ssub.s32 (!%p507_p3), 0, %s593_s20  ;;  %p594_p7 = scmp.lt.s32.totalorder (!%p507_p3), %s593_s20, 0 }
   0xf   : > { %v2235_v0 = vld [vmem:[%s2850_s2] sm:$0xff]  ;;  %s2868_s30 = smov (!%p584_p5, %s2314_s30), 1  ;;  %s2870_s22 = smov (!%p586_p6, %s2116_s22), 31  ;;  %vm713_vm0 = vcmask 130048   ;;  %vm1438_vm1 = vcmask 1041408   ;;  %v857_v19 = vlaneseq  ;;  %vm1413_vm2 = vcmask 31744  }
  0x10   : > { %748 = vmatpush.bf16.msra.mxu0 %v2235_v0  ;;  %s2846_s23 = sshll.u32 %s2868_s30, 5  ;;  %v1371_v9 = vld [vmem:[%s2835_s5] sm:$0x3]  ;;  %vm1261_vm3 = vcmask 1046528   ;;  %vm1978_vm14 = vcmask 257024  }
  0x11   : > { %s2445_s24 = sadd.s32 %s2846_s23, %s2870_s22  ;;  %s2119_s22 = smin.u32 %s595_s21, %s593_s20  ;;  %v1556_v10 = vsel %vm1438_vm1, %v1371_v9, 0  ;;  %v1372_v11 = vld [vmem:[%s2836_s6] sm:$0x3]  ;;  %v2490_v24 = vshrl.u32 %v857_v19, 7 }
  0x12   : > { %s2845_s25 = sshll.u32 %s2445_s24, 2  ;;  %s597_s26 = sand.u32 1, %s2119_s22   ;;  %2240 = vmatpush.bf16.msra.mxu2 %v1556_v10  ;;  %v2477_v12 = vld [vmem:[%s2833_s3] ss:$0 sm:$0xff]  ;;  %v1440_v13 = vsel %vm1438_vm1, %v1372_v11, 0 }
  0x13   : > { %s591_s28 = scalar_lea.vmem %s2851_s0, %s2845_s25  ;;  %s598_s27 = ssub.s32 0, %s597_s26  ;;  %1449 = vmatpush.bf16.msra.mxu1 %v1440_v13  ;;  %2239 = vmatpush.bf16.msra.mxu3 %v1440_v13  ;;  %v2484_v17 = vld [vmem:[%s2834_s4] ss:$0 sm:$0xff]  ;;  %v859_v28 = vadd.s32 8, %v2490_v24  ;;  %v861_v54 = vadd.s32 24, %v2490_v24 }
  0x14   : > { %v2226_v1 = vld [vmem:[%s591_s28] sm:$0xff]  ;;  %v2227_v2 = vld [vmem:[%s591_s28 + $0x8] sm:$0xff]  ;;  %v2228_v3 = vld [vmem:[%s591_s28 + $0x10] sm:$0xff]  ;;  %s2872_s27 = smov (!%p594_p7, %s598_s27), %s597_s26  ;;  %1565 = vmatpush.bf16.msrb.mxu0 %v1556_v10  ;;  %s2852_s20 = sshll.u32 %s2868_s30, 5 }
  0x15   : > { %2169 = vmatmul.msk.bf16.vlgmr.msra.gmra.mxu0 %vm713_vm0, %v2226_v1  ;;  %v2229_v4 = vld [vmem:[%s591_s28 + $0x18] sm:$0xff]  ;;  %v2230_v5 = vld [vmem:[%s591_s28 + $0x20] sm:$0xff]  ;;  %v2231_v6 = vld [vmem:[%s591_s28 + $0x28] sm:$0xff]  ;;  %p2121_p8 = scmp.lt.s32.totalorder %s2872_s27, 0  ;;  %s604_s25 = sadd.s32 2, %s2872_s27  ;;  %v983_v36 = vand.u32 15, %v859_v28 }
  0x16   : > { %v2232_v7 = vld [vmem:[%s591_s28 + $0x30] sm:$0xff]  ;;  %v2233_v8 = vld [vmem:[%s591_s28 + $0x38] sm:$0xff]  ;;  %v997_v62 = vand.u32 15, %v861_v54  ;;  %s2236_s26 = sshll.u32 %s2310_s29, 3 }
  0x17   : > { %s2874_s25 = smov (!%p2121_p8, %s604_s25), %s2872_s27  ;;  %vm1189_vm4 = vcmp.ne.s32.totalorder %v983_v36, 15  ;;  %s2237_s27 = sadd.s32 8, %s2236_s26 }
  0x18   : > { %s2225_s23 = sshll.u32 %s2874_s25, 4  ;;  %vm1191_vm5 = vcmp.ne.s32.totalorder %v997_v62, 15  ;;  %p878_p10 = scmp.lt.s32.totalorder %s2237_s27, 16 }
  0x19   : > { %p610_p9 = scmp.lt.s32.totalorder %s2225_s23, 31  ;;  %s2855_s26 = sshll.u32 %s2445_s24, 2 }
  0x1a   : > { %s897_s29 = scalar_select %p878_p10, 1, 0 }
  0x1b   : > { %s2876_s23 = smov (!%p610_p9, %s2225_s23), 31 }
  0x1c   : > { %s613_s21 = sadd.s32 %s2852_s20, %s2876_s23 }
  0x1d   : > { %s2125_s22 = sshll.u32 %s613_s21, 2 }
  0x1e   : > { %s615_s25 = scalar_lea.vmem %s2831_s1, %s2125_s22 }
  0x1f   : > { %v2234_v14 = vld [vmem:[%s615_s25] sm:$0xff]  ;;  %s2751_s25 = scalar_lea.vmem %s2844_s14, %s2855_s26 }
  0x25   : > { %2170 = vmatmul.msk.bf16.gmra.mxu0 %vm713_vm0, %v2227_v2 }
  0x35   : > { %2171 = vmatmul.msk.bf16.gmra.mxu0 %vm713_vm0, %v2228_v3 }
  0x45   : > { %2172 = vmatmul.msk.bf16.gmra.mxu0 %vm713_vm0, %v2229_v4 }
  0x55   : > { %2173 = vmatmul.msk.bf16.gmra.mxu0 %vm713_vm0, %v2230_v5 }
  0x65   : > { %2174 = vmatmul.msk.bf16.gmra.mxu0 %vm713_vm0, %v2231_v6 }
  0x75   : > { %2175 = vmatmul.msk.bf16.gmra.mxu0 %vm713_vm0, %v2232_v7 }
  0x85   : > { %2176 = vmatmul.msk.bf16.gmra.mxu0 %vm713_vm0, %v2233_v8 }
  0x92   : > { %v750_v15 = vpop.f32.mrf.mxu0 }
  0x93   : > { %v799_v16 = vmul.f32 %v2477_v12, %v750_v15 }
  0x95   : > { %2177 = vmatmul.msk.bf16.gmra.mxu0 %vm713_vm0, %v2234_v14  ;;  %v821_v18 = vadd.f32 %v2484_v17, %v799_v16  ;;  %v863_v16 = vadd.s32 40, %v2490_v24 }
  0x97   : > { %v839_v21 = vmax.f32 %v821_v18, 0.0 }
  0x99   : > { %v1335_v25 = vpack.c.bf16 %v839_v21, %v839_v21  ;;  %v1262_v37 = vrot.slane %v839_v21, 1 }
  0x9a   : > { %v752_v20 = vpop.f32.mrf.mxu0 }
  0x9b   : > { %v800_v22 = vmul.f32 %v2477_v12, %v752_v20  ;;  %v1507_v30 = vunpack.c.l.b16 %v1335_v25 }
  0x9d   : > { %v822_v23 = vadd.f32 %v2484_v17, %v800_v22 }
  0x9f   : > { %v840_v26 = vmax.f32 %v822_v23, 0.0 }
  0xa1   : > { %v1336_v27 = vpack.c.bf16 %v840_v26, %v840_v26  ;;  %v1263_v33 = vrot.slane %v840_v26, 1  ;;  %v1011_v26 = vand.u32 15, %v863_v16 }
  0xa2   : > { %v755_v29 = vpop.f32.mrf.mxu0 }
  0xa3   : > { %v1508_v31 = vunpack.c.l.b16 %v1336_v27  ;;  %v801_v32 = vmul.f32 %v2477_v12, %v755_v29  ;;  %v1264_v39 = vsel %vm1261_vm3, %v1262_v37, %v1263_v33  ;;  %vm1193_vm6 = vcmp.ne.s32.totalorder %v1011_v26, 15 }
  0xa4   : > { %v1353_v44 = vpack.c.bf16 %v1264_v39, %v1264_v39 }
  0xa5   : > { %v823_v34 = vadd.f32 %v2484_v17, %v801_v32  ;;  %v1523_v35 = vpack.c.b16 %v1508_v31, %v1507_v30 }
  0xa6   : > { %v1389_v50 = vunpack.c.l.b16 %v1353_v44 }
  0xa7   : > { %v841_v38 = vmax.f32 %v823_v34, 0.0  ;;  %2187 = vmatmul.msk.bf16.vlgmr.msrb.gmra.mxu0 %vm1413_vm2, %v1523_v35 }
  0xa9   : > { %v1265_v40 = vrot.slane %v841_v38, 1  ;;  %v1337_v48 = vpack.c.bf16 %v841_v38, %v841_v38 }
  0xaa   : > { %v757_v41 = vpop.f32.mrf.mxu0 }
  0xab   : > { %v802_v42 = vmul.f32 %v2477_v12, %v757_v41  ;;  %v1266_v43 = vsel %vm1261_vm3, %v1263_v33, %v1265_v40  ;;  %v1509_v56 = vunpack.c.l.b16 %v1337_v48  ;;  %v1684_v48 = vld [vmem:[%s2838_s8] sm:$0x3] }
  0xac   : > { %v1318_v45 = vsel %vm1189_vm4, %v1266_v43, 0.0  ;;  %v865_v43 = vadd.s32 56, %v2490_v24 }
  0xad   : > { %v824_v46 = vadd.f32 %v2484_v17, %v802_v42  ;;  %v1354_v47 = vpack.c.bf16 %v1318_v45, %v1318_v45 }
  0xaf   : > { %v842_v49 = vmax.f32 %v824_v46, 0.0  ;;  %v1390_v51 = vunpack.c.l.b16 %v1354_v47 }
  0xb1   : > { %v1338_v52 = vpack.c.bf16 %v842_v49, %v842_v49  ;;  %v1405_v53 = vpack.c.b16 %v1390_v51, %v1389_v50  ;;  %v1267_v59 = vrot.slane %v842_v49, 1  ;;  %v1694_v50 = vsel %vm1438_vm1, %v1684_v48, 0 }
  0xb2   : > { %v760_v55 = vpop.f32.mrf.mxu0  ;;  %1703 = vmatpush.bf16.msrb.mxu1 %v1694_v50 }
  0xb3   : > { %v1510_v57 = vunpack.c.l.b16 %v1338_v52  ;;  %v803_v58 = vmul.f32 %v2477_v12, %v760_v55  ;;  %2179 = vmatmul.msk.bf16.vlgmr.msra.gmra.mxu1 %vm1413_vm2, %v1405_v53  ;;  %v1268_v0 = vsel %vm1261_vm3, %v1265_v40, %v1267_v59  ;;  %v1025_v53 = vand.u32 15, %v865_v43 }
  0xb4   : > { %v1355_v5 = vpack.c.bf16 %v1268_v0, %v1268_v0 }
  0xb5   : > { %v825_v60 = vadd.f32 %v2484_v17, %v803_v58  ;;  %v2504_v61 = vpack.c.b16 %v1510_v57, %v1509_v56  ;;  %vm1195_vm7 = vcmp.ne.s32.totalorder %v1025_v53, 15 }
  0xb6   : > { %v1391_v11 = vunpack.c.l.b16 %v1355_v5 }
  0xb7   : > { %v843_v63 = vmax.f32 %v825_v60, 0.0  ;;  %2188 = vmatmul.msk.bf16.gmra.mxu0 %vm1413_vm2, %v2504_v61 }
  0xb9   : > { %v1269_v1 = vrot.slane %v843_v63, 1  ;;  %v1339_v9 = vpack.c.bf16 %v843_v63, %v843_v63 }
  0xba   : > { %v762_v2 = vpop.f32.mrf.mxu0 }
  0xbb   : > { %v804_v3 = vmul.f32 %v2477_v12, %v762_v2  ;;  %v1270_v4 = vsel %vm1261_vm3, %v1267_v59, %v1269_v1  ;;  %v1511_v19 = vunpack.c.l.b16 %v1339_v9 }
  0xbc   : > { %v1320_v6 = vsel %vm1191_vm5, %v1270_v4, 0.0 }
  0xbd   : > { %v826_v7 = vadd.f32 %v2484_v17, %v804_v3  ;;  %v1356_v8 = vpack.c.bf16 %v1320_v6, %v1320_v6 }
  0xbf   : > { %v844_v10 = vmax.f32 %v826_v7, 0.0  ;;  %v1392_v13 = vunpack.c.l.b16 %v1356_v8  ;;  %v867_v7 = vadd.s32 72, %v2490_v24 }
  0xc1   : > { %v1340_v14 = vpack.c.bf16 %v844_v10, %v844_v10  ;;  %v2512_v15 = vpack.c.b16 %v1392_v13, %v1391_v11  ;;  %v1271_v22 = vrot.slane %v844_v10, 1 }
  0xc2   : > { %v765_v18 = vpop.f32.mrf.mxu0 }
  0xc3   : > { %v1512_v20 = vunpack.c.l.b16 %v1340_v14  ;;  %v805_v21 = vmul.f32 %v2477_v12, %v765_v18  ;;  %2180 = vmatmul.msk.bf16.gmra.mxu1 %vm1413_vm2, %v2512_v15  ;;  %v1272_v28 = vsel %vm1261_vm3, %v1269_v1, %v1271_v22  ;;  %v1039_v18 = vand.u32 15, %v867_v7 }
  0xc4   : > { %v1357_v33 = vpack.c.bf16 %v1272_v28, %v1272_v28  ;;  %v1607_v28 = vld [vmem:[%s2837_s7] sm:$0x3] }
  0xc5   : > { %v827_v23 = vadd.f32 %v2484_v17, %v805_v21  ;;  %v2519_v25 = vpack.c.b16 %v1512_v20, %v1511_v19  ;;  %vm1197_vm8 = vcmp.ne.s32.totalorder %v1039_v18, 15 }
  0xc6   : > { %v1393_v39 = vunpack.c.l.b16 %v1357_v33 }
  0xc7   : > { %v845_v27 = vmax.f32 %v827_v23, 0.0  ;;  %2189 = vmatmul.msk.bf16.gmra.mxu0 %vm1413_vm2, %v2519_v25 }
  0xc9   : > { %v1273_v29 = vrot.slane %v845_v27, 1  ;;  %v1341_v37 = vpack.c.bf16 %v845_v27, %v845_v27 }
  0xca   : > { %v767_v30 = vpop.f32.mrf.mxu0 }
  0xcb   : > { %v806_v31 = vmul.f32 %v2477_v12, %v767_v30  ;;  %v1274_v32 = vsel %vm1261_vm3, %v1271_v22, %v1273_v29  ;;  %v1513_v45 = vunpack.c.l.b16 %v1341_v37  ;;  %v1617_v30 = vsel %vm1438_vm1, %v1607_v28, 0 }
  0xcc   : > { %v1322_v34 = vsel %vm1193_vm6, %v1274_v32, 0.0  ;;  %1626 = vmatpush.bf16.msrb.mxu3 %v1617_v30 }
  0xcd   : > { %v828_v35 = vadd.f32 %v2484_v17, %v806_v31  ;;  %v1358_v36 = vpack.c.bf16 %v1322_v34, %v1322_v34 }
  0xcf   : > { %v846_v38 = vmax.f32 %v828_v35, 0.0  ;;  %v1394_v40 = vunpack.c.l.b16 %v1358_v36 }
  0xd1   : > { %v1342_v41 = vpack.c.bf16 %v846_v38, %v846_v38  ;;  %v2527_v42 = vpack.c.b16 %v1394_v40, %v1393_v39  ;;  %v1275_v49 = vrot.slane %v846_v38, 1  ;;  %v869_v39 = vadd.s32 88, %v2490_v24 }
  0xd2   : > { %v770_v44 = vpop.f32.mrf.mxu0 }
  0xd3   : > { %v1514_v46 = vunpack.c.l.b16 %v1342_v41  ;;  %v807_v47 = vmul.f32 %v2477_v12, %v770_v44  ;;  %2181 = vmatmul.msk.bf16.gmra.mxu1 %vm1413_vm2, %v2527_v42  ;;  %v1276_v55 = vsel %vm1261_vm3, %v1273_v29, %v1275_v49  ;;  %v1053_v48 = vand.u32 15, %v869_v39 }
  0xd4   : > { %v1359_v60 = vpack.c.bf16 %v1276_v55, %v1276_v55 }
  0xd5   : > { %v829_v51 = vadd.f32 %v2484_v17, %v807_v47  ;;  %v2538_v52 = vpack.c.b16 %v1514_v46, %v1513_v45  ;;  %vm1199_vm9 = vcmp.ne.s32.totalorder %v1053_v48, 15 }
  0xd6   : > { %v1395_v3 = vunpack.c.l.b16 %v1359_v60 }
  0xd7   : > { %v847_v54 = vmax.f32 %v829_v51, 0.0  ;;  %2190 = vmatmul.msk.bf16.vlgmr.msra.gmra.mxu2 %vm1413_vm2, %v2538_v52 }
  0xd9   : > { %v1277_v56 = vrot.slane %v847_v54, 1  ;;  %v1343_v1 = vpack.c.bf16 %v847_v54, %v847_v54 }
  0xda   : > { %v772_v57 = vpop.f32.mrf.mxu0 }
  0xdb   : > { %v808_v58 = vmul.f32 %v2477_v12, %v772_v57  ;;  %v1278_v59 = vsel %vm1261_vm3, %v1275_v49, %v1277_v56  ;;  %v1515_v9 = vunpack.c.l.b16 %v1343_v1 }
  0xdc   : > { %v1324_v62 = vsel %vm1195_vm7, %v1278_v59, 0.0 }
  0xdd   : > { %v830_v63 = vadd.f32 %v2484_v17, %v808_v58  ;;  %v1360_v0 = vpack.c.bf16 %v1324_v62, %v1324_v62 }
  0xdf   : > { %v848_v2 = vmax.f32 %v830_v63, 0.0  ;;  %v1396_v4 = vunpack.c.l.b16 %v1360_v0 }
  0xe1   : > { %v1344_v5 = vpack.c.bf16 %v848_v2, %v848_v2  ;;  %v2546_v6 = vpack.c.b16 %v1396_v4, %v1395_v3  ;;  %v1279_v13 = vrot.slane %v848_v2, 1  ;;  %v871_v3 = vadd.s32 104, %v2490_v24 }
  0xe2   : > { %v775_v8 = vpop.f32.mrf.mxu0 }
  0xe3   : > { %v1516_v10 = vunpack.c.l.b16 %v1344_v5  ;;  %v809_v11 = vmul.f32 %v2477_v12, %v775_v8  ;;  %2182 = vmatmul.msk.bf16.gmra.mxu1 %vm1413_vm2, %v2546_v6  ;;  %v1280_v20 = vsel %vm1261_vm3, %v1277_v56, %v1279_v13 }
  0xe4   : > { %v1361_v27 = vpack.c.bf16 %v1280_v20, %v1280_v20 }
  0xe5   : > { %v831_v14 = vadd.f32 %v2484_v17, %v809_v11  ;;  %v2553_v16 = vpack.c.b16 %v1516_v10, %v1515_v9 }
  0xe6   : > { %v1397_v35 = vunpack.c.l.b16 %v1361_v27 }
  0xe7   : > { %v849_v19 = vmax.f32 %v831_v14, 0.0  ;;  %2191 = vmatmul.msk.bf16.gmra.mxu2 %vm1413_vm2, %v2553_v16 }
  0xe9   : > { %v1281_v21 = vrot.slane %v849_v19, 1  ;;  %v1345_v33 = vpack.c.bf16 %v849_v19, %v849_v19 }
  0xea   : > { %v777_v22 = vpop.f32.mrf.mxu0 }
  0xeb   : > { %v810_v23 = vmul.f32 %v2477_v12, %v777_v22  ;;  %v1282_v26 = vsel %vm1261_vm3, %v1279_v13, %v1281_v21  ;;  %v1517_v41 = vunpack.c.l.b16 %v1345_v33  ;;  %v1067_v13 = vand.u32 15, %v871_v3 }
  0xec   : > { %v1326_v29 = vsel %vm1197_vm8, %v1282_v26, 0.0 }
  0xed   : > { %v832_v31 = vadd.f32 %v2484_v17, %v810_v23  ;;  %v1362_v32 = vpack.c.bf16 %v1326_v29, %v1326_v29  ;;  %vm1201_vm10 = vcmp.ne.s32.totalorder %v1067_v13, 15 }
  0xef   : > { %v850_v34 = vmax.f32 %v832_v31, 0.0  ;;  %v1398_v36 = vunpack.c.l.b16 %v1362_v32 }
  0xf1   : > { %v1346_v37 = vpack.c.bf16 %v850_v34, %v850_v34  ;;  %v2565_v38 = vpack.c.b16 %v1398_v36, %v1397_v35  ;;  %v1283_v45 = vrot.slane %v850_v34, 1  ;;  %v873_v35 = vadd.s32 120, %v2490_v24 }
  0xf2   : > { %v780_v40 = vpop.f32.mrf.mxu0 }
  0xf3   : > { %v1518_v43 = vunpack.c.l.b16 %v1346_v37  ;;  %v811_v44 = vmul.f32 %v2477_v12, %v780_v40  ;;  %2183 = vmatmul.msk.bf16.gmra.mxu1 %vm1413_vm2, %v2565_v38  ;;  %v1284_v50 = vsel %vm1261_vm3, %v1281_v21, %v1283_v45  ;;  %v898_v40 = vstv %s897_s29 }
  0xf4   : > { %v1363_v56 = vpack.c.bf16 %v1284_v50, %v1284_v50  ;;  %vm2606_vm11 = vcmp.eq.s32.totalorder %v898_v40, 1 }
  0xf5   : > { %v833_v46 = vadd.f32 %v2484_v17, %v811_v44  ;;  %v2572_v47 = vpack.c.b16 %v1518_v43, %v1517_v41 }
  0xf6   : > { %v1399_v63 = vunpack.c.l.b16 %v1363_v56 }
  0xf7   : > { %v851_v49 = vmax.f32 %v833_v46, 0.0  ;;  %2192 = vmatmul.msk.bf16.gmra.mxu2 %vm1413_vm2, %v2572_v47  ;;  %v1081_v46 = vand.u32 15, %v873_v35 }
  0xf9   : > { %v1285_v51 = vrot.slane %v851_v49, 1  ;;  %v1347_v60 = vpack.c.bf16 %v851_v49, %v851_v49  ;;  %vm1203_vm12 = vcmp.ne.s32.totalorder %v1081_v46, 15 }
  0xfa   : > { %v782_v53 = vpop.f32.mrf.mxu0 }
  0xfb   : > { %v812_v54 = vmul.f32 %v2477_v12, %v782_v53  ;;  %v1286_v55 = vsel %vm1261_vm3, %v1283_v45, %v1285_v51  ;;  %v1519_v5 = vunpack.c.l.b16 %v1347_v60  ;;  %v875_v53 = vadd.s32 136, %v2490_v24 }
  0xfc   : > { %v1328_v57 = vsel %vm1199_vm9, %v1286_v55, 0.0 }
  0xfd   : > { %v834_v58 = vadd.f32 %v2484_v17, %v812_v54  ;;  %v1364_v59 = vpack.c.bf16 %v1328_v57, %v1328_v57  ;;  %v1095_v60 = vand.u32 15, %v875_v53 }
  0xff   : > { %v852_v62 = vmax.f32 %v834_v58, 0.0  ;;  %v1400_v0 = vunpack.c.l.b16 %v1364_v59  ;;  %vm1205_vm13 = vcmp.ne.s32.totalorder %v1095_v60, 15 }
 0x101   : > { %v1348_v1 = vpack.c.bf16 %v852_v62, %v852_v62  ;;  %v2580_v2 = vpack.c.b16 %v1400_v0, %v1399_v63  ;;  %v1287_v9 = vrot.slane %v852_v62, 1  ;;  %v2328_v0 = vmov 0.0  }
 0x102   : > { %v785_v4 = vpop.f32.mrf.mxu0 }
 0x103   : > { %v1520_v7 = vunpack.c.l.b16 %v1348_v1  ;;  %v813_v8 = vmul.f32 %v2477_v12, %v785_v4  ;;  %2184 = vmatmul.msk.bf16.vlgmr.msra.gmra.mxu3 %vm1413_vm2, %v2580_v2  ;;  %2203 = vmatmul.msk.bf16.vlgmr.msrb.gmra.mxu1 %vm1413_vm2, %v2512_v15  ;;  %v1288_v18 = vsel %vm1261_vm3, %v1285_v51, %v1287_v9  ;;  %v1297_v1 = vrot.slane %v2328_v0, 1 }
 0x104   : > { %v1365_v22 = vpack.c.bf16 %v1288_v18, %v1288_v18 }
 0x105   : > { %v835_v10 = vadd.f32 %v2484_v17, %v813_v8  ;;  %v2589_v11 = vpack.c.b16 %v1520_v7, %v1519_v5 }
 0x106   : > { %v1401_v30 = vunpack.c.l.b16 %v1365_v22 }
 0x107   : > { %v853_v14 = vmax.f32 %v835_v10, 0.0  ;;  %2193 = vmatmul.msk.bf16.gmra.mxu2 %vm1413_vm2, %v2589_v11 }
 0x109   : > { %v1289_v19 = vrot.slane %v853_v14, 1  ;;  %v1349_v28 = vpack.c.bf16 %v853_v14, %v853_v14 }
 0x10a   : > { %v787_v20 = vpop.f32.mrf.mxu0 }
 0x10b   : > { %v814_v21 = vmul.f32 %v2477_v12, %v787_v20  ;;  %v1290_v15 = vsel %vm1261_vm3, %v1287_v9, %v1289_v19  ;;  %v1521_v36 = vunpack.c.l.b16 %v1349_v28 }
 0x10c   : > { %v1330_v23 = vsel %vm1201_vm10, %v1290_v15, 0.0 }
 0x10d   : > { %v836_v26 = vadd.f32 %v2484_v17, %v814_v21  ;;  %v1366_v27 = vpack.c.bf16 %v1330_v23, %v1330_v23 }
 0x10f   : > { %v854_v29 = vmax.f32 %v836_v26, 0.0  ;;  %v1402_v31 = vunpack.c.l.b16 %v1366_v27 }
 0x111   : > { %v1350_v32 = vpack.c.bf16 %v854_v29, %v854_v29  ;;  %v1411_v33 = vpack.c.b16 %v1402_v31, %v1401_v30  ;;  %v1291_v41 = vrot.slane %v854_v29, 1 }
 0x112   : > { %v790_v34 = vpop.f32.mrf.mxu0 }
 0x113   : > { %v1522_v37 = vunpack.c.l.b16 %v1350_v32  ;;  %v815_v39 = vmul.f32 %v2477_v12, %v790_v34  ;;  %2185 = vmatmul.msk.bf16.gmra.mxu3 %vm1413_vm2, %v1411_v33  ;;  %2204 = vmatmul.msk.bf16.gmra.mxu1 %vm1413_vm2, %v2527_v42  ;;  %v1292_v50 = vsel %vm1261_vm3, %v1289_v19, %v1291_v41 }
 0x114   : > { %v1367_v56 = vpack.c.bf16 %v1292_v50, %v1292_v50  ;;  %v2682_v50 = vld [vmem:[%s2840_s10] ss:$0 sm:$0xff] }
 0x115   : > { %v837_v43 = vadd.f32 %v2484_v17, %v815_v39  ;;  %v2604_v44 = vpack.c.b16 %v1522_v37, %v1521_v36 }
 0x116   : > { %v1403_v3 = vunpack.c.l.b16 %v1367_v56 }
 0x117   : > { %v855_v48 = vmax.f32 %v837_v43, 0.0  ;;  %2194 = vmatmul.msk.bf16.gmra.mxu2 %vm1413_vm2, %v2604_v44 }
 0x119   : > { %v970_v49 = vsel %vm2606_vm11, %v855_v48, 0.0 }
 0x11a   : > { %v1293_v42 = vrot.slane %v970_v49, 1  ;;  %v792_v51 = vpop.f32.mrf.mxu0  ;;  %v1351_v63 = vpack.c.bf16 %v970_v49, %v970_v49 }
 0x11b   : > { %v816_v54 = vmul.f32 %v2477_v12, %v792_v51 }
 0x11c   : > { %v1294_v55 = vsel %vm1261_vm3, %v1291_v41, %v1293_v42  ;;  %v1610_v9 = vunpack.c.l.b16 %v1351_v63 }
 0x11d   : > { %v838_v57 = vadd.f32 %v2484_v17, %v816_v54  ;;  %v1332_v58 = vsel %vm1203_vm12, %v1294_v55, 0.0 }
 0x11e   : > { %v1368_v59 = vpack.c.bf16 %v1332_v58, %v1332_v58 }
 0x11f   : > { %v856_v62 = vmax.f32 %v838_v57, 0.0 }
 0x120   : > { %v1404_v4 = vunpack.c.l.b16 %v1368_v59 }
 0x121   : > { %v971_v5 = vsel %vm2606_vm11, %v856_v62, 0.0 }
 0x122   : > { %v1295_v24 = vrot.slane %v971_v5, 1  ;;  %v1352_v7 = vpack.c.bf16 %v971_v5, %v971_v5  ;;  %v1412_v12 = vpack.c.b16 %v1404_v4, %v1403_v3 }
 0x123   : > { %2205 = vmatmul.msk.bf16.gmra.mxu1 %vm1413_vm2, %v2546_v6 }
 0x124   : > { %v1298_v17 = vsel %vm1261_vm3, %v1295_v24, %v1297_v1  ;;  %2186 = vmatmul.msk.bf16.gmra.mxu3 %vm1413_vm2, %v1412_v12  ;;  %v1296_v8 = vsel %vm1261_vm3, %v1293_v42, %v1295_v24  ;;  %v1611_v10 = vunpack.c.l.b16 %v1352_v7 }
 0x125   : > { %v1334_v13 = vsel %vm1205_vm13, %v1298_v17, 0.0  ;;  %v1369_v14 = vpack.c.bf16 %v1296_v8, %v1296_v8 }
 0x126   : > { %v1370_v18 = vpack.c.bf16 %v1334_v13, %v1334_v13  ;;  %v1612_v19 = vpack.c.b16 %v1611_v10, %v1610_v9 }
 0x127   : > { %v1687_v20 = vunpack.c.l.b16 %v1369_v14 }
 0x128   : > { %v1688_v21 = vunpack.c.l.b16 %v1370_v18 }
 0x12a   : > { %v1689_v15 = vpack.c.b16 %v1688_v21, %v1687_v20 }
 0x130   : > { %v1451_v6 = vpop.f32.mrf.mxu1 }
 0x133   : > { %2206 = vmatmul.msk.bf16.gmra.mxu1 %vm1413_vm2, %v2565_v38  ;;  %v2238_v38 = vld [vmem:[%s2841_s11] sm:$0xff] }
 0x134   : > { %2195 = vmatmul.msk.bf16.vlgmr.msrb.gmra.mxu3 %vm1413_vm2, %v2504_v61  ;;  %1864 = vmatpush.bf16.msrb.mxu2 %v2238_v38 }
 0x138   : > { %v1453_v22 = vpop.f32.mrf.mxu1 }
 0x140   : > { %v1456_v23 = vpop.f32.mrf.mxu1 }
 0x143   : > { %2207 = vmatmul.msk.bf16.gmra.mxu1 %vm1413_vm2, %v2580_v2 }
 0x144   : > { %2196 = vmatmul.msk.bf16.gmra.mxu3 %vm1413_vm2, %v2519_v25 }
 0x148   : > { %v1458_v26 = vpop.f32.mrf.mxu1 }
 0x150   : > { %v1461_v61 = vpop.f32.mrf.mxu1 }
 0x153   : > { %2208 = vmatmul.msk.bf16.gmra.mxu1 %vm1413_vm2, %v1411_v33  ;;  %v1567_v33 = vpop.f32.mrf.mxu0 }
 0x154   : > { %2197 = vmatmul.msk.bf16.gmra.mxu3 %vm1413_vm2, %v2538_v52  ;;  %v1568_v37 = vadd.f32 %v1567_v33, %v1451_v6 }
 0x158   : > { %v2643_v2 = vpop.f32.mrf.mxu1 }
 0x15a   : > { %v1582_v8 = vpop.f32.mrf.mxu2 }
 0x15b   : > { %v1569_v36 = vpop.f32.mrf.mxu0 }
 0x15c   : > { %v1570_v45 = vadd.f32 %v1569_v36, %v1453_v22 }
 0x160   : > { %v2645_v25 = vpop.f32.mrf.mxu1 }
 0x163   : > { %2209 = vmatmul.msk.bf16.gmra.mxu1 %vm1413_vm2, %v1412_v12  ;;  %v1572_v46 = vpop.f32.mrf.mxu0 }
 0x164   : > { %2198 = vmatmul.msk.bf16.gmra.mxu3 %vm1413_vm2, %v2553_v16  ;;  %v1573_v56 = vadd.f32 %v1572_v46, %v1456_v23 }
 0x168   : > { %v2650_v52 = vpop.f32.mrf.mxu1 }
 0x16b   : > { %v1574_v63 = vpop.f32.mrf.mxu0 }
 0x16c   : > { %v1575_v4 = vadd.f32 %v1574_v63, %v1458_v26  ;;  %v1584_v26 = vpop.f32.mrf.mxu2 }
 0x170   : > { %v2656_v28 = vpop.f32.mrf.mxu1 }
 0x173   : > { %2210 = vmatmul.msk.bf16.gmra.mxu1 %vm1413_vm2, %v1689_v15  ;;  %v1577_v17 = vpop.f32.mrf.mxu0 }
 0x174   : > { %2199 = vmatmul.msk.bf16.gmra.mxu3 %vm1413_vm2, %v2572_v47  ;;  %v1578_v13 = vadd.f32 %v1577_v17, %v1461_v61 }
 0x178   : > { %v2660_v16 = vpop.f32.mrf.mxu1 }
 0x17b   : > { %v1579_v23 = vpop.f32.mrf.mxu0 }
 0x17c   : > { %v1580_v38 = vadd.f32 %v1579_v23, %v2643_v2 }
 0x180   : > { %v1705_v31 = vpop.f32.mrf.mxu1 }
 0x184   : > { %2200 = vmatmul.msk.bf16.gmra.mxu3 %vm1413_vm2, %v2589_v11 }
 0x186   : > { %v2654_v27 = vpop.f32.mrf.mxu3 }
 0x188   : > { %v1707_v32 = vpop.f32.mrf.mxu1 }
 0x18e   : > { %v2658_v29 = vpop.f32.mrf.mxu3 }
 0x190   : > { %v1710_v34 = vpop.f32.mrf.mxu1 }
 0x194   : > { %2201 = vmatmul.msk.bf16.gmra.mxu3 %vm1413_vm2, %v2604_v44  ;;  %v2676_v44 = vld [vmem:[%s2839_s9] ss:$0 sm:$0xff] }
 0x196   : > { %v2664_v30 = vpop.f32.mrf.mxu3 }
 0x198   : > { %v1712_v41 = vpop.f32.mrf.mxu1 }
 0x19e   : > { %v2666_v47 = vpop.f32.mrf.mxu3 }
 0x1a0   : > { %v1715_v53 = vpop.f32.mrf.mxu1 }
 0x1a4   : > { %2202 = vmatmul.msk.bf16.gmra.mxu3 %vm1413_vm2, %v1612_v19 }
 0x1a7   : > { %v2669_v11 = vpop.f32.mrf.mxu3 }
 0x1a8   : > { %v1717_v3 = vpop.f32.mrf.mxu1 }
 0x1af   : > { %v2671_v35 = vpop.f32.mrf.mxu3 }
 0x1b0   : > { %v1720_v18 = vpop.f32.mrf.mxu1 }
 0x1b7   : > { %v1628_v39 = vpop.f32.mrf.mxu3 }
 0x1b8   : > { %v1668_v40 = vadd.f32 %v1628_v39, %v1568_v37  ;;  %v1722_v61 = vpop.f32.mrf.mxu1  ;;  %v1583_v39 = vadd.f32 %v1582_v8, %v2645_v25 }
 0x1ba   : > { %v1745_v43 = vadd.f32 %v1705_v31, %v1668_v40 }
 0x1bc   : > { %v1765_v49 = vmul.f32 %v2676_v44, %v1745_v43 }
 0x1be   : > { %v1785_v54 = vadd.f32 %v2682_v50, %v1765_v49 }
 0x1bf   : > { %v1630_v48 = vpop.f32.mrf.mxu3 }
 0x1c0   : > { %v1669_v42 = vadd.f32 %v1630_v48, %v1570_v45  ;;  %v1801_v59 = vmax.f32 %v1785_v54, 0.0  ;;  %v1725_v49 = vpop.f32.mrf.mxu1 }
 0x1c2   : > { %v1746_v51 = vadd.f32 %v1707_v32, %v1669_v42 }
 0x1c4   : > { %v1766_v55 = vmul.f32 %v2676_v44, %v1746_v51  ;;  %v1585_v51 = vadd.f32 %v1584_v26, %v2650_v52 }
 0x1c6   : > { %v1786_v57 = vadd.f32 %v2682_v50, %v1766_v55 }
 0x1c7   : > { %v1633_v58 = vpop.f32.mrf.mxu3 }
 0x1c8   : > { %v1802_v60 = vmax.f32 %v1786_v57, 0.0  ;;  %v1670_v62 = vadd.f32 %v1633_v58, %v1573_v56 }
 0x1ca   : > { %v1817_v0 = vpack.c.bf16 %v1802_v60, %v1801_v59  ;;  %v1747_v1 = vadd.f32 %v1710_v34, %v1670_v62  ;;  %v1727_v59 = vpop.f32.mrf.mxu1 }
 0x1cc   : > { %2215 = vmatmul.msk.bf16.vlgmr.msrb.gmra.mxu2 %vm713_vm0, %v1817_v0  ;;  %v1767_v24 = vmul.f32 %v2676_v44, %v1747_v1 }
 0x1ce   : > { %v1787_v10 = vadd.f32 %v2682_v50, %v1767_v24 }
 0x1cf   : > { %v1635_v5 = vpop.f32.mrf.mxu3 }
 0x1d0   : > { %v1671_v7 = vadd.f32 %v1635_v5, %v1575_v4  ;;  %v1803_v21 = vmax.f32 %v1787_v10, 0.0 }
 0x1d2   : > { %v1748_v12 = vadd.f32 %v1712_v41, %v1671_v7  ;;  %v1587_v41 = vpop.f32.mrf.mxu2  ;;  %v1730_v7 = vpop.f32.mrf.mxu1 }
 0x1d3   : > { %v1588_v60 = vadd.f32 %v1587_v41, %v2656_v28 }
 0x1d4   : > { %v1768_v9 = vmul.f32 %v2676_v44, %v1748_v12 }
 0x1d6   : > { %v1788_v14 = vadd.f32 %v2682_v50, %v1768_v9 }
 0x1d7   : > { %v1638_v19 = vpop.f32.mrf.mxu3 }
 0x1d8   : > { %v1672_v20 = vadd.f32 %v1638_v19, %v1578_v13  ;;  %v1804_v15 = vmax.f32 %v1788_v14, 0.0 }
 0x1da   : > { %v1818_v6 = vpack.c.bf16 %v1804_v15, %v1803_v21  ;;  %v1749_v22 = vadd.f32 %v1715_v53, %v1672_v20  ;;  %v1589_v56 = vpop.f32.mrf.mxu2 }
 0x1db   : > { %v1590_v24 = vadd.f32 %v1589_v56, %v2660_v16  ;;  %v1732_v16 = vpop.f32.mrf.mxu1 }
 0x1dc   : > { %2216 = vmatmul.msk.bf16.gmra.mxu2 %vm713_vm0, %v1818_v6  ;;  %v1769_v32 = vmul.f32 %v2676_v44, %v1749_v22 }
 0x1de   : > { %v1789_v37 = vadd.f32 %v2682_v50, %v1769_v32 }
 0x1df   : > { %v1640_v31 = vpop.f32.mrf.mxu3 }
 0x1e0   : > { %v1673_v33 = vadd.f32 %v1640_v31, %v1580_v38  ;;  %v1805_v46 = vmax.f32 %v1789_v37, 0.0 }
 0x1e2   : > { %v1750_v34 = vadd.f32 %v1717_v3, %v1673_v33  ;;  %v1592_v4 = vpop.f32.mrf.mxu2 }
 0x1e3   : > { %v1593_v14 = vadd.f32 %v1592_v4, %v2654_v27  ;;  %v1735_v27 = vpop.f32.mrf.mxu1 }
 0x1e4   : > { %v1770_v36 = vmul.f32 %v2676_v44, %v1750_v34 }
 0x1e6   : > { %v1790_v40 = vadd.f32 %v2682_v50, %v1770_v36 }
 0x1e7   : > { %v1643_v43 = vpop.f32.mrf.mxu3 }
 0x1e8   : > { %v1674_v45 = vadd.f32 %v1643_v43, %v1583_v39  ;;  %v1806_v48 = vmax.f32 %v1790_v40, 0.0 }
 0x1ea   : > { %v1819_v2 = vpack.c.bf16 %v1806_v48, %v1805_v46  ;;  %v1751_v42 = vadd.f32 %v1720_v18, %v1674_v45  ;;  %v1594_v13 = vpop.f32.mrf.mxu2 }
 0x1eb   : > { %v1595_v23 = vadd.f32 %v1594_v13, %v2658_v29  ;;  %v1737_v48 = vpop.f32.mrf.mxu1 }
 0x1ec   : > { %2217 = vmatmul.msk.bf16.gmra.mxu2 %vm713_vm0, %v1819_v2  ;;  %v1771_v54 = vmul.f32 %v2676_v44, %v1751_v42 }
 0x1ee   : > { %v1791_v58 = vadd.f32 %v2682_v50, %v1771_v54 }
 0x1ef   : > { %v1645_v53 = vpop.f32.mrf.mxu3 }
 0x1f0   : > { %v1675_v55 = vadd.f32 %v1645_v53, %v1585_v51  ;;  %v1807_v1 = vmax.f32 %v1791_v58, 0.0 }
 0x1f2   : > { %v1752_v25 = vadd.f32 %v1722_v61, %v1675_v55  ;;  %v1597_v26 = vpop.f32.mrf.mxu2 }
 0x1f3   : > { %v1598_v36 = vadd.f32 %v1597_v26, %v2664_v30 }
 0x1f4   : > { %v1772_v57 = vmul.f32 %v2676_v44, %v1752_v25 }
 0x1f6   : > { %v1792_v62 = vadd.f32 %v2682_v50, %v1772_v57  ;;  %v1740_v57 = vpop.f32.mrf.mxu1 }
 0x1f7   : > { %v1648_v63 = vpop.f32.mrf.mxu3 }
 0x1f8   : > { %v1676_v0 = vadd.f32 %v1648_v63, %v1588_v60  ;;  %v1808_v3 = vmax.f32 %v1792_v62, 0.0 }
 0x1fa   : > { %v1820_v52 = vpack.c.bf16 %v1808_v3, %v1807_v1  ;;  %v1753_v5 = vadd.f32 %v1725_v49, %v1676_v0  ;;  %v1599_v29 = vpop.f32.mrf.mxu2 }
 0x1fb   : > { %v1600_v2 = vadd.f32 %v1599_v29, %v2666_v47 }
 0x1fc   : > { %2218 = vmatmul.msk.bf16.gmra.mxu2 %vm713_vm0, %v1820_v52  ;;  %v1773_v17 = vmul.f32 %v2676_v44, %v1753_v5 }
 0x1fe   : > { %v1793_v10 = vadd.f32 %v2682_v50, %v1773_v17 }
 0x1ff   : > { %v1650_v12 = vpop.f32.mrf.mxu3 }
 0x200   : > { %v1677_v8 = vadd.f32 %v1650_v12, %v1590_v24  ;;  %v1809_v21 = vmax.f32 %v1793_v10, 0.0 }
 0x202   : > { %v1754_v9 = vadd.f32 %v1727_v59, %v1677_v8  ;;  %v1602_v30 = vpop.f32.mrf.mxu2 }
 0x203   : > { %v1603_v56 = vadd.f32 %v1602_v30, %v2669_v11  ;;  %v1742_v11 = vpop.f32.mrf.mxu1 }
 0x204   : > { %v1774_v28 = vmul.f32 %v2676_v44, %v1754_v9 }
 0x206   : > { %v1794_v18 = vadd.f32 %v2682_v50, %v1774_v28  ;;  %v2742_v28 = vld [vmem:[%s2843_s13] ss:$0 sm:$0xff] }
 0x207   : > { %v1653_v19 = vpop.f32.mrf.mxu3 }
 0x208   : > { %v1678_v20 = vadd.f32 %v1653_v19, %v1593_v14  ;;  %v1810_v15 = vmax.f32 %v1794_v18, 0.0 }
 0x20a   : > { %v1821_v6 = vpack.c.bf16 %v1810_v15, %v1809_v21  ;;  %v1755_v22 = vadd.f32 %v1730_v7, %v1678_v20  ;;  %v1604_v0 = vpop.f32.mrf.mxu2 }
 0x20b   : > { %v1605_v1 = vadd.f32 %v1604_v0, %v2671_v35  ;;  %v2737_v35 = vld [vmem:[%s2842_s12] ss:$0 sm:$0xff] }
 0x20c   : > { %2219 = vmatmul.msk.bf16.gmra.mxu2 %vm713_vm0, %v1821_v6  ;;  %v1775_v31 = vmul.f32 %v2676_v44, %v1755_v22 }
 0x20e   : > { %v1795_v34 = vadd.f32 %v2682_v50, %v1775_v31 }
 0x20f   : > { %v1655_v38 = vpop.f32.mrf.mxu3 }
 0x210   : > { %v1679_v32 = vadd.f32 %v1655_v38, %v1595_v23  ;;  %v1811_v41 = vmax.f32 %v1795_v34, 0.0 }
 0x212   : > { %v1756_v33 = vadd.f32 %v1732_v16, %v1679_v32 }
 0x214   : > { %v1776_v61 = vmul.f32 %v2676_v44, %v1756_v33 }
 0x216   : > { %v1796_v37 = vadd.f32 %v2682_v50, %v1776_v61 }
 0x217   : > { %v1658_v39 = vpop.f32.mrf.mxu3 }
 0x218   : > { %v1680_v40 = vadd.f32 %v1658_v39, %v1598_v36  ;;  %v1812_v43 = vmax.f32 %v1796_v37, 0.0 }
 0x21a   : > { %v1822_v45 = vpack.c.bf16 %v1812_v43, %v1811_v41  ;;  %v1757_v46 = vadd.f32 %v1735_v27, %v1680_v40 }
 0x21c   : > { %2220 = vmatmul.msk.bf16.gmra.mxu2 %vm713_vm0, %v1822_v45  ;;  %v1777_v42 = vmul.f32 %v2676_v44, %v1757_v46 }
 0x21e   : > { %v1797_v55 = vadd.f32 %v2682_v50, %v1777_v42 }
 0x21f   : > { %v1660_v49 = vpop.f32.mrf.mxu3 }
 0x220   : > { %v1681_v51 = vadd.f32 %v1660_v49, %v1600_v2  ;;  %v1813_v60 = vmax.f32 %v1797_v55, 0.0 }
 0x222   : > { %v1758_v53 = vadd.f32 %v1737_v48, %v1681_v51 }
 0x224   : > { %v1778_v54 = vmul.f32 %v2676_v44, %v1758_v53 }
 0x226   : > { %v1798_v25 = vadd.f32 %v2682_v50, %v1778_v54 }
 0x227   : > { %v1663_v58 = vpop.f32.mrf.mxu3 }
 0x228   : > { %v1682_v59 = vadd.f32 %v1663_v58, %v1603_v56  ;;  %v1814_v62 = vmax.f32 %v1798_v25, 0.0 }
 0x22a   : > { %v1823_v47 = vpack.c.bf16 %v1814_v62, %v1813_v60  ;;  %v1759_v63 = vadd.f32 %v1740_v57, %v1682_v59 }
 0x22c   : > { %2221 = vmatmul.msk.bf16.gmra.mxu2 %vm713_vm0, %v1823_v47  ;;  %v1779_v52 = vmul.f32 %v2676_v44, %v1759_v63 }
 0x22e   : > { %v1799_v24 = vadd.f32 %v2682_v50, %v1779_v52 }
 0x22f   : > { %v1665_v3 = vpop.f32.mrf.mxu3 }
 0x230   : > { %v1683_v4 = vadd.f32 %v1665_v3, %v1605_v1  ;;  %v1815_v17 = vmax.f32 %v1799_v24, 0.0 }
 0x232   : > { %v1760_v5 = vadd.f32 %v1742_v11, %v1683_v4 }
 0x234   : > { %v1780_v7 = vmul.f32 %v2676_v44, %v1760_v5 }
 0x236   : > { %v1800_v12 = vadd.f32 %v2682_v50, %v1780_v7 }
 0x238   : > { %v1816_v8 = vmax.f32 %v1800_v12, 0.0 }
 0x23a   : > { %v1824_v9 = vpack.c.bf16 %v1816_v8, %v1815_v17 }
 0x23c   : > { %2222 = vmatmul.msk.bf16.gmra.mxu2 %vm713_vm0, %v1824_v9 }
 0x24f   : > { %v1866_v10 = vpop.f32.mrf.mxu2 }
 0x250   : > { %v1910_v44 = vmul.f32 %v2737_v35, %v1866_v10 }
 0x252   : > { %v1930_v50 = vadd.f32 %v2742_v28, %v1910_v44 }
 0x254   : > { %v1946_v13 = vmax.f32 %v1930_v50, 0.0 }
 0x256   : > { %v1962_v14 = vpack.c.bf16 %v1946_v13, %v1946_v13 }
 0x257   : > { %v1868_v18 = vpop.f32.mrf.mxu2 }
 0x258   : > { %1979 = vst.msk [vmem:[%s2751_s25] sm:$0xf] %vm1978_vm14, %v1962_v14  ;;  %v1911_v19 = vmul.f32 %v2737_v35, %v1868_v18 }
 0x25a   : > { %v1931_v20 = vadd.f32 %v2742_v28, %v1911_v19 }
 0x25c   : > { %v1947_v21 = vmax.f32 %v1931_v20, 0.0 }
 0x25e   : > { %v1963_v15 = vpack.c.bf16 %v1947_v21, %v1947_v21 }
 0x25f   : > { %v1871_v16 = vpop.f32.mrf.mxu2 }
 0x260   : > { %1980 = vst.msk [vmem:[%s2751_s25 + $0x4] sm:$0xf] %vm1978_vm14, %v1963_v15  ;;  %v1912_v6 = vmul.f32 %v2737_v35, %v1871_v16 }
 0x262   : > { %v1932_v22 = vadd.f32 %v2742_v28, %v1912_v6 }
 0x264   : > { %v1948_v23 = vmax.f32 %v1932_v22, 0.0 }
 0x266   : > { %v1964_v26 = vpack.c.bf16 %v1948_v23, %v1948_v23 }
 0x267   : > { %v1873_v38 = vpop.f32.mrf.mxu2 }
 0x268   : > { %1981 = vst.msk [vmem:[%s2751_s25 + $0x8] sm:$0xf] %vm1978_vm14, %v1964_v26  ;;  %v1913_v31 = vmul.f32 %v2737_v35, %v1873_v38 }
 0x26a   : > { %v1933_v32 = vadd.f32 %v2742_v28, %v1913_v31 }
 0x26c   : > { %v1949_v33 = vmax.f32 %v1933_v32, 0.0 }
 0x26e   : > { %v1965_v27 = vpack.c.bf16 %v1949_v33, %v1949_v33 }
 0x26f   : > { %v1876_v61 = vpop.f32.mrf.mxu2 }
 0x270   : > { %1982 = vst.msk [vmem:[%s2751_s25 + $0xc] sm:$0xf] %vm1978_vm14, %v1965_v27  ;;  %v1914_v34 = vmul.f32 %v2737_v35, %v1876_v61 }
 0x272   : > { %v1934_v36 = vadd.f32 %v2742_v28, %v1914_v34 }
 0x274   : > { %v1950_v37 = vmax.f32 %v1934_v36, 0.0 }
 0x276   : > { %v1966_v39 = vpack.c.bf16 %v1950_v37, %v1950_v37 }
 0x277   : > { %v1878_v40 = vpop.f32.mrf.mxu2 }
 0x278   : > { %1983 = vst.msk [vmem:[%s2751_s25 + $0x10] sm:$0xf] %vm1978_vm14, %v1966_v39  ;;  %v1915_v41 = vmul.f32 %v2737_v35, %v1878_v40 }
 0x27a   : > { %v1935_v43 = vadd.f32 %v2742_v28, %v1915_v41 }
 0x27c   : > { %v1951_v29 = vmax.f32 %v1935_v43, 0.0 }
 0x27e   : > { %v1967_v45 = vpack.c.bf16 %v1951_v29, %v1951_v29 }
 0x27f   : > { %v1881_v46 = vpop.f32.mrf.mxu2 }
 0x280   : > { %1984 = vst.msk [vmem:[%s2751_s25 + $0x14] sm:$0xf] %vm1978_vm14, %v1967_v45  ;;  %v1916_v48 = vmul.f32 %v2737_v35, %v1881_v46 }
 0x282   : > { %v1936_v2 = vadd.f32 %v2742_v28, %v1916_v48 }
 0x284   : > { %v1952_v49 = vmax.f32 %v1936_v2, 0.0 }
 0x286   : > { %v1968_v42 = vpack.c.bf16 %v1952_v49, %v1952_v49 }
 0x287   : > { %v1883_v51 = vpop.f32.mrf.mxu2 }
 0x288   : > { %1985 = vst.msk [vmem:[%s2751_s25 + $0x18] sm:$0xf] %vm1978_vm14, %v1968_v42  ;;  %v1917_v53 = vmul.f32 %v2737_v35, %v1883_v51 }
 0x28a   : > { %v1937_v30 = vadd.f32 %v2742_v28, %v1917_v53 }
 0x28c   : > { %v1953_v54 = vmax.f32 %v1937_v30, 0.0 }
 0x28e   : > { %v1969_v55 = vpack.c.bf16 %v1953_v54, %v1953_v54 }
 0x28f   : > { %v1886_v56 = vpop.f32.mrf.mxu2 }
 0x290   : > { %1986 = vst.msk [vmem:[%s2751_s25 + $0x1c] sm:$0xf] %vm1978_vm14, %v1969_v55  ;;  %v1918_v25 = vmul.f32 %v2737_v35, %v1886_v56 }
 0x292   : > { %v1938_v57 = vadd.f32 %v2742_v28, %v1918_v25 }
 0x294   : > { %v1954_v58 = vmax.f32 %v1938_v57, 0.0 }
 0x296   : > { %v1970_v59 = vpack.c.bf16 %v1954_v58, %v1954_v58 }
 0x297   : > { %v1888_v60 = vpop.f32.mrf.mxu2 }
 0x298   : > { %1987 = vst.msk [vmem:[%s2751_s25 + $0x20] sm:$0xf] %vm1978_vm14, %v1970_v59  ;;  %v1919_v62 = vmul.f32 %v2737_v35, %v1888_v60 }
 0x29a   : > { %v1939_v47 = vadd.f32 %v2742_v28, %v1919_v62 }
 0x29c   : > { %v1955_v63 = vmax.f32 %v1939_v47, 0.0 }
 0x29e   : > { %v1971_v0 = vpack.c.bf16 %v1955_v63, %v1955_v63 }
 0x29f   : > { %v1891_v1 = vpop.f32.mrf.mxu2 }
 0x2a0   : > { %1988 = vst.msk [vmem:[%s2751_s25 + $0x24] sm:$0xf] %vm1978_vm14, %v1971_v0  ;;  %v1920_v3 = vmul.f32 %v2737_v35, %v1891_v1 }
 0x2a2   : > { %v1940_v52 = vadd.f32 %v2742_v28, %v1920_v3 }
 0x2a4   : > { %v1956_v4 = vmax.f32 %v1940_v52, 0.0 }
 0x2a6   : > { %v1972_v11 = vpack.c.bf16 %v1956_v4, %v1956_v4 }
 0x2a7   : > { %v1893_v5 = vpop.f32.mrf.mxu2 }
 0x2a8   : > { %1989 = vst.msk [vmem:[%s2751_s25 + $0x28] sm:$0xf] %vm1978_vm14, %v1972_v11  ;;  %v1921_v24 = vmul.f32 %v2737_v35, %v1893_v5 }
 0x2aa   : > { %v1941_v7 = vadd.f32 %v2742_v28, %v1921_v24 }
 0x2ac   : > { %v1957_v12 = vmax.f32 %v1941_v7, 0.0 }
 0x2ae   : > { %v1973_v17 = vpack.c.bf16 %v1957_v12, %v1957_v12 }
 0x2af   : > { %v1896_v8 = vpop.f32.mrf.mxu2 }
 0x2b0   : > { %1990 = vst.msk [vmem:[%s2751_s25 + $0x2c] sm:$0xf] %vm1978_vm14, %v1973_v17  ;;  %v1922_v9 = vmul.f32 %v2737_v35, %v1896_v8 }
 0x2b2   : > { %v1942_v10 = vadd.f32 %v2742_v28, %v1922_v9 }
 0x2b4   : > { %v1958_v44 = vmax.f32 %v1942_v10, 0.0 }
 0x2b6   : > { %v1974_v50 = vpack.c.bf16 %v1958_v44, %v1958_v44 }
 0x2b7   : > { %v1898_v13 = vpop.f32.mrf.mxu2 }
 0x2b8   : > { %1991 = vst.msk [vmem:[%s2751_s25 + $0x30] sm:$0xf] %vm1978_vm14, %v1974_v50  ;;  %v1923_v14 = vmul.f32 %v2737_v35, %v1898_v13 }
 0x2ba   : > { %v1943_v18 = vadd.f32 %v2742_v28, %v1923_v14 }
 0x2bc   : > { %v1959_v19 = vmax.f32 %v1943_v18, 0.0 }
 0x2be   : > { %v1975_v20 = vpack.c.bf16 %v1959_v19, %v1959_v19 }
 0x2bf   : > { %v1901_v21 = vpop.f32.mrf.mxu2 }
 0x2c0   : > { %1992 = vst.msk [vmem:[%s2751_s25 + $0x34] sm:$0xf] %vm1978_vm14, %v1975_v20  ;;  %v1924_v15 = vmul.f32 %v2737_v35, %v1901_v21 }
 0x2c2   : > { %v1944_v16 = vadd.f32 %v2742_v28, %v1924_v15 }
 0x2c4   : > { %v1960_v6 = vmax.f32 %v1944_v16, 0.0 }
 0x2c6   : > { %v1976_v22 = vpack.c.bf16 %v1960_v6, %v1960_v6 }
 0x2c7   : > { %v1903_v23 = vpop.f32.mrf.mxu2 }
 0x2c8   : > { %1993 = vst.msk [vmem:[%s2751_s25 + $0x38] sm:$0xf] %vm1978_vm14, %v1976_v22  ;;  %v1925_v26 = vmul.f32 %v2737_v35, %v1903_v23 }
 0x2ca   : > { %v1945_v38 = vadd.f32 %v2742_v28, %v1925_v26 }
 0x2cc   : > { %v1961_v31 = vmax.f32 %v1945_v38, 0.0 }
 0x2ce   : > { %v1977_v32 = vpack.c.bf16 %v1961_v31, %v1961_v31 }
 0x2d0   : > { %1994 = vst.msk [vmem:[%s2751_s25 + $0x3c] sm:$0xf] %vm1978_vm14, %v1977_v32 }
 0x2d1 PF: > { %s24_s17 = sadd.s32 1, %s2326_s17   ;;  %s2856_s24 = sld [smem:[#allocation2_spill]] }
 0x2d2   : > { %p21_p11 = scmp.ge.s32.totalorder %s24_s17, 6   ;;  %s2857_s29 = smov %s2318_s15 }
 0x2d3   : > { %s2858_s30 = smov %s2322_s16  ;;  %s2859_s15 = smov %s2862_s18 }
 0x2d4   :  { %23 = sbr.rel (!%p21_p11) target bundleno = 4 (0x4), region = 109 }
 0x2d7   : > { %s2860_s16 = smov %s2856_s24 }

</bundles_post_ra>
